<compile_context>
chip_gen: v5e
topology: v5e:2x2
jax: 0.10.0
libtpu: 0.0.40
codegen_flags: <defaults>
</compile_context>

<pallas_src>
import functools
import math

import jax
import jax.numpy as jnp
import numpy as np
from jax.experimental import pallas as pl
from jax.experimental.pallas import tpu as pltpu


def _sigmoid(z, approx):
    denom = 1.0 + jnp.exp(-z)
    if approx:
        # EUP approximate reciprocal (separate issue slot, ~<=2^-8 rel. error).
        return pl.reciprocal(denom, approx=True)
    return 1.0 / denom


def _cbam_kernel(x_ref, w_eca_ref, w_sa_avg_ref, w_sa_max_ref,
                 b_eca_ref, b_sa_ref, o_ref, *, approx_sigmoid):
    """Fused ECA channel attention + spatial attention for one batch tile.

    x_ref:        (BT, C, S)  input slab, S = H*W (lane-dense)
    w_eca_ref:    (C, C)      Conv1d(k, 'same') over channels, as matmul matrix
    w_sa_avg_ref: (S, S)      KxK 'same' Conv2d taps for the avg map, as matmul matrix
    w_sa_max_ref: (S, S)      KxK 'same' Conv2d taps for the max map, as matmul matrix
    b_eca_ref:    (1,) SMEM   Conv1d bias (scalar)
    b_sa_ref:     (1,) SMEM   Conv2d bias (scalar)
    o_ref:        (BT, C, S)
    """
    x = x_ref[...].astype(jnp.float32)                        # (BT, C, S)

    # ---- ECA channel attention: global avg pool -> 1D conv over C -> sigmoid ----
    avg_c = jnp.mean(x, axis=-1)                               # (BT, C)  lane reduce
    ca_logit = jnp.dot(avg_c, w_eca_ref[...],
                       preferred_element_type=jnp.float32) + b_eca_ref[0]
    ca = _sigmoid(ca_logit, approx_sigmoid)                    # (BT, C)
    x1 = x * ca[:, :, None]                                    # channel gate

    # ---- spatial attention: [mean_c, max_c] -> KxK conv -> sigmoid ----
    # Two K=S dots summed instead of concat + one K=2S dot (no lane relayout).
    avg_s = jnp.mean(x1, axis=1)                               # (BT, S)  sublane reduce
    max_s = jnp.max(x1, axis=1)                                # (BT, S)
    sa_logit = (jnp.dot(avg_s, w_sa_avg_ref[...], preferred_element_type=jnp.float32)
                + jnp.dot(max_s, w_sa_max_ref[...], preferred_element_type=jnp.float32)
                + b_sa_ref[0])
    sa = _sigmoid(sa_logit, approx_sigmoid)                    # (BT, S)

    o_ref[...] = (x1 * sa[:, None, :]).astype(o_ref.dtype)     # full-lane store


# ---------------- one-time conv -> matmul reformulation (host side, numpy) ----------------

def _conv1d_same_matrix(w_eca, C):
    """(1,1,k) 'same' Conv1d on a length-C sequence -> (C, C) matrix M (y = x @ M)."""
    w = np.asarray(w_eca, np.float32).reshape(-1)
    k = w.shape[0]
    p = (k - 1) // 2
    m = np.zeros((C, C), np.float32)
    for j in range(k):
        for c_out in range(C):
            c_in = c_out + j - p
            if 0 <= c_in < C:
                m[c_in, c_out] += w[j]
    return m


def _conv2d_same_matrices(w_sa, H, W):
    """(1,2,K,K) 'same' Conv2d on [avg, max] maps -> two (S, S) matrices."""
    w = np.asarray(w_sa, np.float32)
    K = w.shape[-1]
    p = (K - 1) // 2
    S = H * W
    hh, ww = np.meshgrid(np.arange(H), np.arange(W), indexing="ij")
    s_out = (hh * W + ww).reshape(-1)
    mats = np.zeros((2, S, S), np.float32)
    for ch in range(2):
        for dy in range(K):
            for dx in range(K):
                h_in = hh + dy - p
                w_in = ww + dx - p
                valid = ((h_in >= 0) & (h_in < H) & (w_in >= 0) & (w_in < W)).reshape(-1)
                s_in = (np.clip(h_in, 0, H - 1) * W + np.clip(w_in, 0, W - 1)).reshape(-1)
                np.add.at(mats[ch], (s_in[valid], s_out[valid]), w[0, ch, dy, dx])
    return mats[0], mats[1]


def prepare_cbam(params, in_channels, H, W):
    """One-time lowering of the conv weights into matmul matrices (kept f32)."""
    C = in_channels
    # TODO(synk): the dense (S,S) SA matrices assume 2*S*S*4 bytes fits VMEM;
    #             for large feature maps switch to a K-tiled SA matmul grid or a
    #             shifted-adds 2*K*K-tap formulation (v7x has only 64 MiB VMEM).
    w_sa_avg, w_sa_max = _conv2d_same_matrices(params["w_sa"], H, W)
    return {
        "C": C, "H": H, "W": W,
        "w_eca_mat": jnp.asarray(_conv1d_same_matrix(params["w_eca"], C)),
        "w_sa_avg": jnp.asarray(w_sa_avg),
        "w_sa_max": jnp.asarray(w_sa_max),
        "b_eca": jnp.asarray(np.asarray(params["b_eca"], np.float32).reshape(1)),
        "b_sa": jnp.asarray(np.asarray(params["b_sa"], np.float32).reshape(1)),
    }


# ------------------------------------ wrapper ------------------------------------

def cbam_block(x_nchw, prepared, *, b_tile=None, approx_sigmoid=True):
    """Forward pass equivalent to CBAMBlock(in_channels, ca='eca')."""
    N, C, H, W = x_nchw.shape
    assert (C, H, W) == (prepared["C"], prepared["H"], prepared["W"])
    S = H * W

    if b_tile is None:
        if N <= 8:
            b_tile = N          # tiny batch: one grid step (grid overhead > work)
        else:
            # Fill the MXU M dim (<=256 rows) while keeping >=2 grid steps so both
            # v7x TensorCores get work and block DMAs overlap compute.
            b_tile = max(d for d in range(1, min(N, 256) + 1)
                         if N % d == 0 and N // d >= 2)
    assert N % b_tile == 0, "b_tile must divide batch size"

    x = x_nchw.reshape(N, C, S)     # pure reshape of NCHW, no transpose

    kernel = functools.partial(_cbam_kernel, approx_sigmoid=approx_sigmoid)
    smem_spec = pl.BlockSpec(memory_space=pltpu.MemorySpace.SMEM)

    def run(single_buffer_weights):
        def wspec(shape):
            if single_buffer_weights:
                # constant index_map -> one resident VMEM copy is enough
                return pl.BlockSpec(shape, lambda b: (0,) * len(shape),
                                    pipeline_mode=pl.Buffered(1))
            return pl.BlockSpec(shape, lambda b: (0,) * len(shape))

        return pl.pallas_call(
            kernel,
            out_shape=jax.ShapeDtypeStruct((N, C, S), x_nchw.dtype),
            grid_spec=pltpu.PrefetchScalarGridSpec(
                num_scalar_prefetch=0,
                grid=(N // b_tile,),
                in_specs=[
                    pl.BlockSpec((b_tile, C, S), lambda b: (b, 0, 0)),   # x slab
                    wspec((C, C)),                                       # ECA conv matrix
                    wspec((S, S)),                                       # SA conv (avg taps)
                    wspec((S, S)),                                       # SA conv (max taps)
                    smem_spec,                                           # ECA bias scalar
                    smem_spec,                                           # SA bias scalar
                ],
                out_specs=pl.BlockSpec((b_tile, C, S), lambda b: (b, 0, 0)),
            ),
            compiler_params=pltpu.CompilerParams(
                dimension_semantics=("parallel",)),
        )(x, prepared["w_eca_mat"], prepared["w_sa_avg"], prepared["w_sa_max"],
          prepared["b_eca"], prepared["b_sa"])

    try:
        out = run(single_buffer_weights=True)
    except Exception:
        # pipeline_mode=pl.Buffered(1) not supported by this jax build ->
        # fall back to default double buffering of the constant weights.
        out = run(single_buffer_weights=False)

    return out.reshape(N, C, H, W)


# ---------------------------- pure-JAX reference ----------------------------

def _reference(x, params):
    xf = x.astype(jnp.float32)

    # ECA: adaptive avg pool -> Conv1d(1,1,k, padding='same') over channels -> sigmoid
    avg = jnp.mean(xf, axis=(2, 3))                            # (N, C)
    k = params["w_eca"].shape[-1]
    p = (k - 1) // 2
    ca = jax.lax.conv_general_dilated(
        avg[:, None, :], params["w_eca"], (1,), [(p, p)],
        dimension_numbers=("NCH", "OIH", "NCH"))
    ca = jax.nn.sigmoid(ca + params["b_eca"][None, :, None])[:, 0, :]
    x1 = xf * ca[:, :, None, None]

    # Spatial attention: [mean_c, max_c] -> KxK 'same' conv -> sigmoid
    avg_s = jnp.mean(x1, axis=1, keepdims=True)
    max_s = jnp.max(x1, axis=1, keepdims=True)
    sp = jnp.concatenate([avg_s, max_s], axis=1)               # (N, 2, H, W)
    K = params["w_sa"].shape[-1]
    ps = (K - 1) // 2
    sa = jax.lax.conv_general_dilated(
        sp, params["w_sa"], (1, 1), [(ps, ps), (ps, ps)],
        dimension_numbers=("NCHW", "OIHW", "NCHW"))
    sa = jax.nn.sigmoid(sa + params["b_sa"][None, :, None, None])   # (N, 1, H, W)
    return x1 * sa


def init_params(key, in_channels, gamma=2, bias=1, k_sa=7):
    """Parameters matching ECABlock (Conv1d(1,1,k)) + SpatialAttentionBlock conv."""
    C = in_channels
    k_eca = int(abs(math.log(C, 2) + bias) / gamma)
    k_eca = k_eca if k_eca % 2 else k_eca + 1

    k1, k2, k3, k4 = jax.random.split(key, 4)
    b1 = 1.0 / math.sqrt(1 * k_eca)
    w_eca = jax.random.uniform(k1, (1, 1, k_eca), jnp.float32, -b1, b1)
    b_eca = jax.random.uniform(k2, (1,), jnp.float32, -b1, b1)
    b2 = 1.0 / math.sqrt(2 * k_sa * k_sa)
    w_sa = jax.random.uniform(k3, (1, 2, k_sa, k_sa), jnp.float32, -b2, b2)
    b_sa = jax.random.uniform(k4, (1,), jnp.float32, -b2, b2)
    return {"w_eca": w_eca, "b_eca": b_eca, "w_sa": w_sa, "b_sa": b_sa}


if __name__ == "__main__":
    key = jax.random.PRNGKey(0)
    kx, kp = jax.random.split(key)

    N, C, H, W = 2, 8, 16, 16            # in_channels=8 -> ECA k_size=3; S=256
    x = jax.random.normal(kx, (N, C, H, W), jnp.float32)
    params = init_params(kp, C)
    prepared = prepare_cbam(params, C, H, W)   # one-time conv->matmul lowering

    ref = _reference(x, params)

    # Exact-math path (full-precision sigmoid): bit-tight check vs JAX reference.
    out_exact = jax.block_until_ready(cbam_block(x, prepared, approx_sigmoid=False))
    assert out_exact.shape == (N, C, H, W)
    assert jnp.allclose(out_exact, ref, atol=1e-4, rtol=1e-4), "exact-path mismatch"

    # Fast path: EUP approximate reciprocal inside the two sigmoid gates
    # (~<=2^-8 relative error per gate -> looser tolerance).
    out_fast = jax.block_until_ready(cbam_block(x, prepared, approx_sigmoid=True))
    assert jnp.allclose(out_fast, ref, atol=2e-2, rtol=2e-2), "approx-path mismatch"

    print("KERNEL_OK")
</pallas_src>

<mosaic_0001>
module attributes {stable_mosaic.version = 11 : i64} {
  func.func @_cbam_kernel(%arg0: i32, %arg1: memref<2x8x256xf32, #tpu.memory_space<vmem>>, %arg2: memref<8x8xf32, #tpu.memory_space<vmem>>, %arg3: memref<256x256xf32, #tpu.memory_space<vmem>>, %arg4: memref<256x256xf32, #tpu.memory_space<vmem>>, %arg5: memref<1xf32, #tpu.memory_space<smem>>, %arg6: memref<1xf32, #tpu.memory_space<smem>>, %arg7: memref<2x8x256xf32, #tpu.memory_space<vmem>>) attributes {dimension_semantics = [#tpu.dimension_semantics<parallel>], iteration_bounds = array<i64: 1>, scalar_prefetch = 0 : i64, scratch_operands = 0 : i64, tpu.core_type = #tpu.core_type<tc>, window_params = [{transform_indices = @transform_0, window_bounds = array<i64: 2, 8, 256>}, {pipeline_mode = #tpu.pipeline_mode<synchronous>, transform_indices = @transform_1, window_bounds = array<i64: 8, 8>}, {pipeline_mode = #tpu.pipeline_mode<synchronous>, transform_indices = @transform_2, window_bounds = array<i64: 256, 256>}, {pipeline_mode = #tpu.pipeline_mode<synchronous>, transform_indices = @transform_3, window_bounds = array<i64: 256, 256>}, {transform_indices = @transform_4, window_bounds = array<i64: 1>}, {transform_indices = @transform_5, window_bounds = array<i64: 1>}, {transform_indices = @transform_6, window_bounds = array<i64: 2, 8, 256>}]} {
    %c0 = arith.constant 0 : index
    %c0_0 = arith.constant 0 : index
    %c0_1 = arith.constant 0 : index
    %0 = vector.load %arg1[%c0, %c0_0, %c0_1] : memref<2x8x256xf32, #tpu.memory_space<vmem>>, vector<2x8x256xf32>
    %cst = arith.constant dense<0.000000e+00> : vector<2x8xf32>
    %1 = vector.multi_reduction <add>, %0, %cst [2] : vector<2x8x256xf32> to vector<2x8xf32>
    %cst_2 = arith.constant 2.560000e+02 : f32
    %2 = vector.broadcast %cst_2 : f32 to vector<2x8xf32>
    %3 = arith.divf %1, %2 : vector<2x8xf32>
    %c0_3 = arith.constant 0 : index
    %c0_4 = arith.constant 0 : index
    %4 = vector.load %arg2[%c0_3, %c0_4] : memref<8x8xf32, #tpu.memory_space<vmem>>, vector<8x8xf32>
    %cst_5 = arith.constant dense<0.000000e+00> : vector<2x8xf32>
    %5 = tpu.matmul %3, %4, %cst_5 {dimension_numbers = #tpu.dot_dimension_numbers<[1], [0], [0], [1], [0, 0, 1, 1], [], []>} : vector<2x8xf32>, vector<8x8xf32>, vector<2x8xf32> -> vector<2x8xf32>
    %c0_6 = arith.constant 0 : index
    %6 = memref.load %arg5[%c0_6] : memref<1xf32, #tpu.memory_space<smem>>
    %7 = vector.broadcast %6 : f32 to vector<2x8xf32>
    %8 = arith.addf %5, %7 : vector<2x8xf32>
    %cst_7 = arith.constant 0.000000e+00 : f32
    %9 = vector.broadcast %cst_7 : f32 to vector<2x8xf32>
    %10 = arith.subf %9, %8 : vector<2x8xf32>
    %11 = math.exp %10 : vector<2x8xf32>
    %cst_8 = arith.constant 1.000000e+00 : f32
    %12 = vector.broadcast %cst_8 : f32 to vector<2x8xf32>
    %13 = arith.addf %12, %11 : vector<2x8xf32>
    %cst_9 = arith.constant 1.000000e+00 : f32
    %14 = vector.broadcast %cst_9 : f32 to vector<2x8xf32>
    %15 = arith.divf %14, %13 : vector<2x8xf32>
    %16 = vector.shape_cast %15 : vector<2x8xf32> to vector<2x8x1xf32>
    %17 = vector.broadcast %16 : vector<2x8x1xf32> to vector<2x8x256xf32>
    %18 = arith.mulf %0, %17 : vector<2x8x256xf32>
    %cst_10 = arith.constant dense<0.000000e+00> : vector<2x256xf32>
    %19 = vector.multi_reduction <add>, %18, %cst_10 [1] : vector<2x8x256xf32> to vector<2x256xf32>
    %cst_11 = arith.constant 8.000000e+00 : f32
    %20 = vector.broadcast %cst_11 : f32 to vector<2x256xf32>
    %21 = arith.divf %19, %20 : vector<2x256xf32>
    %cst_12 = arith.constant dense<0xFF800000> : vector<2x256xf32>
    %22 = vector.multi_reduction <maximumf>, %18, %cst_12 [1] : vector<2x8x256xf32> to vector<2x256xf32>
    %c0_13 = arith.constant 0 : index
    %c0_14 = arith.constant 0 : index
    %23 = vector.load %arg3[%c0_13, %c0_14] : memref<256x256xf32, #tpu.memory_space<vmem>>, vector<256x256xf32>
    %cst_15 = arith.constant dense<0.000000e+00> : vector<2x256xf32>
    %24 = tpu.matmul %21, %23, %cst_15 {dimension_numbers = #tpu.dot_dimension_numbers<[1], [0], [0], [1], [0, 0, 1, 1], [], []>} : vector<2x256xf32>, vector<256x256xf32>, vector<2x256xf32> -> vector<2x256xf32>
    %c0_16 = arith.constant 0 : index
    %c0_17 = arith.constant 0 : index
    %25 = vector.load %arg4[%c0_16, %c0_17] : memref<256x256xf32, #tpu.memory_space<vmem>>, vector<256x256xf32>
    %cst_18 = arith.constant dense<0.000000e+00> : vector<2x256xf32>
    %26 = tpu.matmul %22, %25, %cst_18 {dimension_numbers = #tpu.dot_dimension_numbers<[1], [0], [0], [1], [0, 0, 1, 1], [], []>} : vector<2x256xf32>, vector<256x256xf32>, vector<2x256xf32> -> vector<2x256xf32>
    %27 = arith.addf %24, %26 : vector<2x256xf32>
    %c0_19 = arith.constant 0 : index
    %28 = memref.load %arg6[%c0_19] : memref<1xf32, #tpu.memory_space<smem>>
    %29 = vector.broadcast %28 : f32 to vector<2x256xf32>
    %30 = arith.addf %27, %29 : vector<2x256xf32>
    %cst_20 = arith.constant 0.000000e+00 : f32
    %31 = vector.broadcast %cst_20 : f32 to vector<2x256xf32>
    %32 = arith.subf %31, %30 : vector<2x256xf32>
    %33 = math.exp %32 : vector<2x256xf32>
    %cst_21 = arith.constant 1.000000e+00 : f32
    %34 = vector.broadcast %cst_21 : f32 to vector<2x256xf32>
    %35 = arith.addf %34, %33 : vector<2x256xf32>
    %cst_22 = arith.constant 1.000000e+00 : f32
    %36 = vector.broadcast %cst_22 : f32 to vector<2x256xf32>
    %37 = arith.divf %36, %35 : vector<2x256xf32>
    %38 = vector.shape_cast %37 : vector<2x256xf32> to vector<2x1x256xf32>
    %39 = vector.broadcast %38 : vector<2x1x256xf32> to vector<2x8x256xf32>
    %40 = arith.mulf %18, %39 : vector<2x8x256xf32>
    %c0_23 = arith.constant 0 : index
    %c0_24 = arith.constant 0 : index
    %c0_25 = arith.constant 0 : index
    %41 = vector.load %arg7[%c0_23, %c0_24, %c0_25] : memref<2x8x256xf32, #tpu.memory_space<vmem>>, vector<2x8x256xf32>
    tpu.vector_store %arg7[%c0_23, %c0_24, %c0_25], %40 {strides = array<i32>} : memref<2x8x256xf32, #tpu.memory_space<vmem>>, vector<2x8x256xf32>,
    return
  }
  func.func @transform_0(%arg0: i32) -> (i32, i32, i32) {
    %c0_i32 = arith.constant 0 : i32
    %c0_i32_0 = arith.constant 0 : i32
    %c0_i32_1 = arith.constant 0 : i32
    return %arg0, %c0_i32, %c0_i32_0 : i32, i32, i32
  }
  func.func @transform_1(%arg0: i32) -> (i32, i32) {
    %c0_i32 = arith.constant 0 : i32
    %c0_i32_0 = arith.constant 0 : i32
    %c0_i32_1 = arith.constant 0 : i32
    return %c0_i32, %c0_i32_0 : i32, i32
  }
  func.func @transform_2(%arg0: i32) -> (i32, i32) {
    %c0_i32 = arith.constant 0 : i32
    %c0_i32_0 = arith.constant 0 : i32
    %c0_i32_1 = arith.constant 0 : i32
    return %c0_i32, %c0_i32_0 : i32, i32
  }
  func.func @transform_3(%arg0: i32) -> (i32, i32) {
    %c0_i32 = arith.constant 0 : i32
    %c0_i32_0 = arith.constant 0 : i32
    %c0_i32_1 = arith.constant 0 : i32
    return %c0_i32, %c0_i32_0 : i32, i32
  }
  func.func @transform_4(%arg0: i32) -> i32 {
    %c0_i32 = arith.constant 0 : i32
    %c0_i32_0 = arith.constant 0 : i32
    return %c0_i32 : i32
  }
  func.func @transform_5(%arg0: i32) -> i32 {
    %c0_i32 = arith.constant 0 : i32
    %c0_i32_0 = arith.constant 0 : i32
    return %c0_i32 : i32
  }
  func.func @transform_6(%arg0: i32) -> (i32, i32, i32) {
    %c0_i32 = arith.constant 0 : i32
    %c0_i32_0 = arith.constant 0 : i32
    %c0_i32_1 = arith.constant 0 : i32
    return %arg0, %c0_i32, %c0_i32_0 : i32, i32, i32
  }
}

module attributes {stable_mosaic.version = 11 : i64} {
  func.func @_cbam_kernel(%arg0: i32, %arg1: memref<2x8x256xf32, #tpu.memory_space<vmem>>, %arg2: memref<8x8xf32, #tpu.memory_space<vmem>>, %arg3: memref<256x256xf32, #tpu.memory_space<vmem>>, %arg4: memref<256x256xf32, #tpu.memory_space<vmem>>, %arg5: memref<1xf32, #tpu.memory_space<smem>>, %arg6: memref<1xf32, #tpu.memory_space<smem>>, %arg7: memref<2x8x256xf32, #tpu.memory_space<vmem>>) attributes {dimension_semantics = [#tpu.dimension_semantics<parallel>], iteration_bounds = array<i64: 1>, scalar_prefetch = 0 : i64, scratch_operands = 0 : i64, tpu.core_type = #tpu.core_type<tc>, window_params = [{transform_indices = @transform_0, window_bounds = array<i64: 2, 8, 256>}, {pipeline_mode = #tpu.pipeline_mode<synchronous>, transform_indices = @transform_1, window_bounds = array<i64: 8, 8>}, {pipeline_mode = #tpu.pipeline_mode<synchronous>, transform_indices = @transform_2, window_bounds = array<i64: 256, 256>}, {pipeline_mode = #tpu.pipeline_mode<synchronous>, transform_indices = @transform_3, window_bounds = array<i64: 256, 256>}, {transform_indices = @transform_4, window_bounds = array<i64: 1>}, {transform_indices = @transform_5, window_bounds = array<i64: 1>}, {transform_indices = @transform_6, window_bounds = array<i64: 2, 8, 256>}]} {
    %c0 = arith.constant 0 : index
    %c0_0 = arith.constant 0 : index
    %c0_1 = arith.constant 0 : index
    %0 = vector.load %arg1[%c0, %c0_0, %c0_1] : memref<2x8x256xf32, #tpu.memory_space<vmem>>, vector<2x8x256xf32>
    %cst = arith.constant dense<0.000000e+00> : vector<2x8xf32>
    %1 = vector.multi_reduction <add>, %0, %cst [2] : vector<2x8x256xf32> to vector<2x8xf32>
    %cst_2 = arith.constant 2.560000e+02 : f32
    %2 = vector.broadcast %cst_2 : f32 to vector<2x8xf32>
    %3 = arith.divf %1, %2 : vector<2x8xf32>
    %c0_3 = arith.constant 0 : index
    %c0_4 = arith.constant 0 : index
    %4 = vector.load %arg2[%c0_3, %c0_4] : memref<8x8xf32, #tpu.memory_space<vmem>>, vector<8x8xf32>
    %cst_5 = arith.constant dense<0.000000e+00> : vector<2x8xf32>
    %5 = tpu.matmul %3, %4, %cst_5 {dimension_numbers = #tpu.dot_dimension_numbers<[1], [0], [0], [1], [0, 0, 1, 1], [], []>} : vector<2x8xf32>, vector<8x8xf32>, vector<2x8xf32> -> vector<2x8xf32>
    %c0_6 = arith.constant 0 : index
    %6 = memref.load %arg5[%c0_6] : memref<1xf32, #tpu.memory_space<smem>>
    %7 = vector.broadcast %6 : f32 to vector<2x8xf32>
    %8 = arith.addf %5, %7 : vector<2x8xf32>
    %cst_7 = arith.constant 0.000000e+00 : f32
    %9 = vector.broadcast %cst_7 : f32 to vector<2x8xf32>
    %10 = arith.subf %9, %8 : vector<2x8xf32>
    %11 = math.exp %10 : vector<2x8xf32>
    %cst_8 = arith.constant 1.000000e+00 : f32
    %12 = vector.broadcast %cst_8 : f32 to vector<2x8xf32>
    %13 = arith.addf %12, %11 : vector<2x8xf32>
    %cst_9 = arith.constant 1.000000e+00 : f32
    %14 = vector.broadcast %cst_9 : f32 to vector<2x8xf32>
    %15 = arith.divf %14, %13 : vector<2x8xf32>
    %16 = vector.shape_cast %15 : vector<2x8xf32> to vector<2x8x1xf32>
    %17 = vector.broadcast %16 : vector<2x8x1xf32> to vector<2x8x256xf32>
    %18 = arith.mulf %0, %17 : vector<2x8x256xf32>
    %cst_10 = arith.constant dense<0.000000e+00> : vector<2x256xf32>
    %19 = vector.multi_reduction <add>, %18, %cst_10 [1] : vector<2x8x256xf32> to vector<2x256xf32>
    %cst_11 = arith.constant 8.000000e+00 : f32
    %20 = vector.broadcast %cst_11 : f32 to vector<2x256xf32>
    %21 = arith.divf %19, %20 : vector<2x256xf32>
    %cst_12 = arith.constant dense<0xFF800000> : vector<2x256xf32>
    %22 = vector.multi_reduction <maximumf>, %18, %cst_12 [1] : vector<2x8x256xf32> to vector<2x256xf32>
    %c0_13 = arith.constant 0 : index
    %c0_14 = arith.constant 0 : index
    %23 = vector.load %arg3[%c0_13, %c0_14] : memref<256x256xf32, #tpu.memory_space<vmem>>, vector<256x256xf32>
    %cst_15 = arith.constant dense<0.000000e+00> : vector<2x256xf32>
    %24 = tpu.matmul %21, %23, %cst_15 {dimension_numbers = #tpu.dot_dimension_numbers<[1], [0], [0], [1], [0, 0, 1, 1], [], []>} : vector<2x256xf32>, vector<256x256xf32>, vector<2x256xf32> -> vector<2x256xf32>
    %c0_16 = arith.constant 0 : index
    %c0_17 = arith.constant 0 : index
    %25 = vector.load %arg4[%c0_16, %c0_17] : memref<256x256xf32, #tpu.memory_space<vmem>>, vector<256x256xf32>
    %cst_18 = arith.constant dense<0.000000e+00> : vector<2x256xf32>
    %26 = tpu.matmul %22, %25, %cst_18 {dimension_numbers = #tpu.dot_dimension_numbers<[1], [0], [0], [1], [0, 0, 1, 1], [], []>} : vector<2x256xf32>, vector<256x256xf32>, vector<2x256xf32> -> vector<2x256xf32>
    %27 = arith.addf %24, %26 : vector<2x256xf32>
    %c0_19 = arith.constant 0 : index
    %28 = memref.load %arg6[%c0_19] : memref<1xf32, #tpu.memory_space<smem>>
    %29 = vector.broadcast %28 : f32 to vector<2x256xf32>
    %30 = arith.addf %27, %29 : vector<2x256xf32>
    %cst_20 = arith.constant 0.000000e+00 : f32
    %31 = vector.broadcast %cst_20 : f32 to vector<2x256xf32>
    %32 = arith.subf %31, %30 : vector<2x256xf32>
    %33 = math.exp %32 : vector<2x256xf32>
    %cst_21 = arith.constant 1.000000e+00 : f32
    %34 = vector.broadcast %cst_21 : f32 to vector<2x256xf32>
    %35 = arith.addf %34, %33 : vector<2x256xf32>
    %cst_22 = arith.constant 1.000000e+00 : f32
    %36 = vector.broadcast %cst_22 : f32 to vector<2x256xf32>
    %37 = arith.divf %36, %35 : vector<2x256xf32>
    %38 = vector.shape_cast %37 : vector<2x256xf32> to vector<2x1x256xf32>
    %39 = vector.broadcast %38 : vector<2x1x256xf32> to vector<2x8x256xf32>
    %40 = arith.mulf %18, %39 : vector<2x8x256xf32>
    %c0_23 = arith.constant 0 : index
    %c0_24 = arith.constant 0 : index
    %c0_25 = arith.constant 0 : index
    %41 = vector.load %arg7[%c0_23, %c0_24, %c0_25] : memref<2x8x256xf32, #tpu.memory_space<vmem>>, vector<2x8x256xf32>
    tpu.vector_store %arg7[%c0_23, %c0_24, %c0_25], %40 {strides = array<i32>} : memref<2x8x256xf32, #tpu.memory_space<vmem>>, vector<2x8x256xf32>,
    return
  }
  func.func @transform_0(%arg0: i32) -> (i32, i32, i32) {
    %c0_i32 = arith.constant 0 : i32
    %c0_i32_0 = arith.constant 0 : i32
    %c0_i32_1 = arith.constant 0 : i32
    return %arg0, %c0_i32, %c0_i32_0 : i32, i32, i32
  }
  func.func @transform_1(%arg0: i32) -> (i32, i32) {
    %c0_i32 = arith.constant 0 : i32
    %c0_i32_0 = arith.constant 0 : i32
    %c0_i32_1 = arith.constant 0 : i32
    return %c0_i32, %c0_i32_0 : i32, i32
  }
  func.func @transform_2(%arg0: i32) -> (i32, i32) {
    %c0_i32 = arith.constant 0 : i32
    %c0_i32_0 = arith.constant 0 : i32
    %c0_i32_1 = arith.constant 0 : i32
    return %c0_i32, %c0_i32_0 : i32, i32
  }
  func.func @transform_3(%arg0: i32) -> (i32, i32) {
    %c0_i32 = arith.constant 0 : i32
    %c0_i32_0 = arith.constant 0 : i32
    %c0_i32_1 = arith.constant 0 : i32
    return %c0_i32, %c0_i32_0 : i32, i32
  }
  func.func @transform_4(%arg0: i32) -> i32 {
    %c0_i32 = arith.constant 0 : i32
    %c0_i32_0 = arith.constant 0 : i32
    return %c0_i32 : i32
  }
  func.func @transform_5(%arg0: i32) -> i32 {
    %c0_i32 = arith.constant 0 : i32
    %c0_i32_0 = arith.constant 0 : i32
    return %c0_i32 : i32
  }
  func.func @transform_6(%arg0: i32) -> (i32, i32, i32) {
    %c0_i32 = arith.constant 0 : i32
    %c0_i32_0 = arith.constant 0 : i32
    %c0_i32_1 = arith.constant 0 : i32
    return %arg0, %c0_i32, %c0_i32_0 : i32, i32, i32
  }
}

</mosaic_0001>

<bundles_post_ra>
// kernel: tpu_custom_call.1
= control target key start
LH: loop header
LB: loop body
LE: loop exit
PB: predicated region body
PF: predicated region fallthrough
CT: control target
= control target key end

     0   :  { %13 = vsyncpa [#allocation5], 0  ;;  %s913_s0 = inlined_call_operand.hbm [shape: f32[2,8,256], index: 0, kind: input, shape index: {}]   ;;  %s914_s1 = inlined_call_operand.hbm [shape: f32[8,8], index: 1, kind: input, shape index: {}]   ;;  %s915_s2 = inlined_call_operand.hbm [shape: f32[256,256], index: 2, kind: input, shape index: {}]   ;;  %s916_s3 = inlined_call_operand.hbm [shape: f32[256,256], index: 3, kind: input, shape index: {}]   ;;  %s917_s4 = inlined_call_operand.<no memory space> [shape: f32[1], index: 4, kind: input, shape index: {}]   ;;  %s918_s5 = inlined_call_operand.<no memory space> [shape: f32[1], index: 5, kind: input, shape index: {}]   ;;  %s919_s6 = inlined_call_operand.hbm [shape: f32[2,8,256], index: 6, kind: output, shape index: {}]  }
   0x1   :  { %14 = vsyncpa [#allocation8], 0 }
   0x2   :  { %15 = vsyncpa [#allocation11], 0  ;;  %s35_s23 = sshll.u32 %s914_s1, 4  ;;  %s36_s23 = int_to_ptr.hbm [resolvable:$true] %s35_s23 }
   0x3   :  { %16 = vsyncpa [#allocation6], 0  ;;  %s782_s24 = smov [#allocation7]   ;;  %s21_s28 = sshll.u32 %s913_s0, 4  ;;  %s22_s28 = int_to_ptr.hbm [resolvable:$true] %s21_s28 }
   0x4   :  { %s37_s25 = sshll.u32 %s782_s24, 4  ;;  %s783_s29 = smov [#allocation4]   ;;  %s38_s25 = int_to_ptr.vmem [resolvable:$true] %s37_s25 }
   0x5   :  { %40 = dma.hbm_to_vmem [thread:$0]  %s36_s23, 128, %s38_s25, [#allocation8]  }
   0x6   :  { %s23_s30 = sshll.u32 %s783_s29, 4  ;;  %s784_s7 = smov 256   ;;  %s24_s30 = int_to_ptr.vmem [resolvable:$true] %s23_s30 }
   0x7   :  { %s785_s8 = smov 16   ;;  %s45_s10 = sshll.u32 %s915_s2, 4  ;;  %s46_s10 = int_to_ptr.hbm [resolvable:$true] %s45_s10 }
   0x8   :  { %29 = dma.hbm_to_vmem [thread:$0]  %s22_s28, 512, %s24_s30, [#allocation5], %s784_s7, %s784_s7, %s785_s8  }
   0x9   :  { %s786_s11 = smov [#allocation9]   ;;  %s58_s14 = sshll.u32 %s916_s3, 4  ;;  %s59_s14 = int_to_ptr.hbm [resolvable:$true] %s58_s14 }
   0xa   :  { %s47_s12 = sshll.u32 %s786_s11, 4  ;;  %s787_s15 = smov [#allocation10]   ;;  %s48_s12 = int_to_ptr.vmem [resolvable:$true] %s47_s12 }
   0xb   :  { %53 = dma.hbm_to_vmem [thread:$0]  %s46_s10, 8192, %s48_s12, [#allocation8], %s784_s7, %s784_s7, %s785_s8  }
   0xc   :  { %s60_s16 = sshll.u32 %s787_s15, 4  ;;  %s61_s16 = int_to_ptr.vmem [resolvable:$true] %s60_s16 }
   0xd   :  { %66 = dma.hbm_to_vmem [thread:$0]  %s59_s14, 8192, %s61_s16, [#allocation11], %s784_s7, %s784_s7, %s785_s8  }
   0xe   :  { %774 = dma.done.wait [#allocation5], 512  }
   0xf   :  { %775 = vsyncadd [#allocation5], 4294966784 }
  0x10   :  { %776 = dma.done.wait [#allocation8], 8320  }
  0x11   :  { %777 = vsyncadd [#allocation8], 4294958976 }
  0x12   :  { %778 = dma.done.wait [#allocation11], 8192  }
  0x13   :  { %779 = vsyncadd [#allocation11], 4294959104  ;;  %v847_v0 = vld [vmem:[#allocation4] sm:$0xff]  ;;  %v849_v1 = vld [vmem:[#allocation4 + $0x8] sm:$0xff]  ;;  %v788_v6 = vmov 256.0   ;;  %v111_v14 = vlaneseq  ;;  %vm115_vm1 = vcmask 1041409   ;;  %v108_v24 = vstv %s917_s4 }
  0x14   :  { %v91_v2 = vadd.f32 %v849_v1, %v847_v0  ;;  %v853_v3 = vld [vmem:[#allocation4 + $0x10] sm:$0xff]  ;;  %v855_v4 = vld [vmem:[#allocation4 + $0x18] sm:$0xff]  ;;  %638 = vrcp.f32 %v788_v6  ;;  %v106_v7 = vld [vmem:[#allocation7] sm:$0xff]  ;;  %vm117_vm2 = vcmask 64512   ;;  %vm585_vm15 = vcmask 1040384   ;;  %s611_s21 = sshll.u32 %s919_s6, 4  ;;  %s612_s21 = int_to_ptr.hbm [resolvable:$true] %s611_s21 }
  0x15   :  { %v94_v5 = vadd.f32 %v855_v4, %v853_v3  ;;  %135 = vmatpush.msra.mxu0 %v106_v7  ;;  %v112_v16 = vand.u32 127, %v111_v14  ;;  %v161_v23 = vshrl.u32 %v111_v14, 7  ;;  %v330_v29 = vld [vmem:[#allocation10 + $0xf0] sm:$0xff]  ;;  %v331_v31 = vld [vmem:[#allocation10 + $0xf8] sm:$0xff]  ;;  %v328_v33 = vld [vmem:[#allocation10 + $0xe0] sm:$0xff] }
  0x16   :  { %92 = vadd.xlane.f32.xlu0 %v91_v2  ;;  %v362_v30 = vld [vmem:[#allocation10 + $0x1f0] sm:$0xff]  ;;  %372 = vmatpush.msra.mxu1 %v330_v29  ;;  %v363_v32 = vld [vmem:[#allocation10 + $0x1f8] sm:$0xff]  ;;  %v360_v34 = vld [vmem:[#allocation10 + $0x1e0] sm:$0xff] }
  0x17   :  { %636 = vset.pattern.permute.xlu1 %v161_v23  ;;  %637 = vset.pattern.permute.xlu0 %v161_v23  ;;  %v329_v36 = vld [vmem:[#allocation10 + $0xe8] sm:$0xff]  ;;  %v326_v38 = vld [vmem:[#allocation10 + $0xd0] sm:$0xff]  ;;  %v327_v41 = vld [vmem:[#allocation10 + $0xd8] sm:$0xff] }
  0x18   :  { %392 = vmatpush.msra.mxu2 %v362_v30  ;;  %412 = vmatpush.msra.mxu3 %v331_v31  ;;  %v361_v37 = vld [vmem:[#allocation10 + $0x1e8] sm:$0xff]  ;;  %v358_v40 = vld [vmem:[#allocation10 + $0x1d0] sm:$0xff]  ;;  %v359_v42 = vld [vmem:[#allocation10 + $0x1d8] sm:$0xff] }
  0x19   :  { %432 = vmatpush.msrb.mxu0 %v363_v32  ;;  %373 = vmatpush.msra.mxu1 %v328_v33  ;;  %v324_v43 = vld [vmem:[#allocation10 + $0xc0] sm:$0xff]  ;;  %v325_v45 = vld [vmem:[#allocation10 + $0xc8] sm:$0xff]  ;;  %v322_v47 = vld [vmem:[#allocation10 + $0xb0] sm:$0xff] }
  0x1a   :  { %v639_v8 = vpop.eup %638  ;;  %393 = vmatpush.msra.mxu2 %v360_v34  ;;  %413 = vmatpush.msra.mxu3 %v329_v36  ;;  %v356_v44 = vld [vmem:[#allocation10 + $0x1c0] sm:$0xff]  ;;  %v357_v46 = vld [vmem:[#allocation10 + $0x1c8] sm:$0xff]  ;;  %v354_v48 = vld [vmem:[#allocation10 + $0x1b0] sm:$0xff] }
  0x1b   :  { %v98_v9 = vmul.f32 256.0, %v639_v8  ;;  %vm102_vm0 = vweird.f32 %v639_v8  ;;  %433 = vmatpush.msrb.mxu0 %v361_v37  ;;  %374 = vmatpush.msra.mxu1 %v326_v38  ;;  %v323_v49 = vld [vmem:[#allocation10 + $0xb8] sm:$0xff]  ;;  %v320_v51 = vld [vmem:[#allocation10 + $0xa0] sm:$0xff]  ;;  %v321_v53 = vld [vmem:[#allocation10 + $0xa8] sm:$0xff] }
  0x1c   :  { %394 = vmatpush.msra.mxu2 %v358_v40  ;;  %414 = vmatpush.msra.mxu3 %v327_v41  ;;  %v355_v50 = vld [vmem:[#allocation10 + $0x1b8] sm:$0xff]  ;;  %v352_v52 = vld [vmem:[#allocation10 + $0x1a0] sm:$0xff]  ;;  %v353_v54 = vld [vmem:[#allocation10 + $0x1a8] sm:$0xff] }
  0x1d   :  { %v99_v10 = vsub.f32 1.0, %v98_v9  ;;  %434 = vmatpush.msrb.mxu0 %v359_v42  ;;  %375 = vmatpush.msra.mxu1 %v324_v43  ;;  %v318_v55 = vld [vmem:[#allocation10 + $0x90] sm:$0xff]  ;;  %v319_v58 = vld [vmem:[#allocation10 + $0x98] sm:$0xff]  ;;  %v316_v61 = vld [vmem:[#allocation10 + $0x80] sm:$0xff] }
  0x1e   :  { %95 = vadd.xlane.f32.xlu0 %v94_v5  ;;  %395 = vmatpush.msra.mxu2 %v356_v44  ;;  %v350_v56 = vld [vmem:[#allocation10 + $0x190] sm:$0xff]  ;;  %v351_v59 = vld [vmem:[#allocation10 + $0x198] sm:$0xff]  ;;  %v348_v62 = vld [vmem:[#allocation10 + $0x180] sm:$0xff] }
  0x1f   :  { %v100_v11 = vmul.f32 %v639_v8, %v99_v10  ;;  %415 = vmatpush.msra.mxu3 %v325_v45  ;;  %435 = vmatpush.msrb.mxu0 %v357_v46  ;;  %v317_v63 = vld [vmem:[#allocation10 + $0x88] sm:$0xff]  ;;  %v314_v6 = vld [vmem:[#allocation10 + $0x70] sm:$0xff]  ;;  %v315_v9 = vld [vmem:[#allocation10 + $0x78] sm:$0xff] }
  0x20   :  { %376 = vmatpush.msra.mxu1 %v322_v47  ;;  %396 = vmatpush.msra.mxu2 %v354_v48  ;;  %v349_v2 = vld [vmem:[#allocation10 + $0x188] sm:$0xff]  ;;  %v346_v7 = vld [vmem:[#allocation10 + $0x170] sm:$0xff]  ;;  %v347_v10 = vld [vmem:[#allocation10 + $0x178] sm:$0xff] }
  0x21   :  { %v101_v12 = vadd.f32 %v639_v8, %v100_v11  ;;  %416 = vmatpush.msra.mxu3 %v323_v49  ;;  %436 = vmatpush.msrb.mxu0 %v355_v50  ;;  %v344_v14 = vld [vmem:[#allocation10 + $0x160] sm:$0xff]  ;;  %v341_v29 = vld [vmem:[#allocation10 + $0x148] sm:$0xff]  ;;  %v306_v30 = vld [vmem:[#allocation10 + $0x30] sm:$0xff] }
  0x22   :  { %377 = vmatpush.msra.mxu1 %v320_v51  ;;  %397 = vmatpush.msra.mxu2 %v352_v52  ;;  %v338_v31 = vld [vmem:[#allocation10 + $0x130] sm:$0xff]  ;;  %v307_v32 = vld [vmem:[#allocation10 + $0x38] sm:$0xff]  ;;  %v304_v34 = vld [vmem:[#allocation10 + $0x20] sm:$0xff] }
  0x23   :  { %v103_v15 = vsel %vm102_vm0, %v639_v8, %v101_v12  ;;  %417 = vmatpush.msra.mxu3 %v321_v53  ;;  %437 = vmatpush.msrb.mxu0 %v353_v54  ;;  %v339_v33 = vld [vmem:[#allocation10 + $0x138] sm:$0xff]  ;;  %v305_v36 = vld [vmem:[#allocation10 + $0x28] sm:$0xff]  ;;  %v302_v38 = vld [vmem:[#allocation10 + $0x10] sm:$0xff] }
  0x24   :  { %378 = vmatpush.msra.mxu1 %v318_v55  ;;  %398 = vmatpush.msra.mxu2 %v350_v56  ;;  %v337_v37 = vld [vmem:[#allocation10 + $0x128] sm:$0xff]  ;;  %v303_v40 = vld [vmem:[#allocation10 + $0x18] sm:$0xff]  ;;  %v300_v42 = vld [vmem:[#allocation10] sm:$0xff] }
  0x25   :  { %418 = vmatpush.msra.mxu3 %v319_v58  ;;  %438 = vmatpush.msrb.mxu0 %v351_v59  ;;  %v335_v41 = vld [vmem:[#allocation10 + $0x118] sm:$0xff]  ;;  %v332_v43 = vld [vmem:[#allocation10 + $0x100] sm:$0xff]  ;;  %v301_v45 = vld [vmem:[#allocation10 + $0x8] sm:$0xff] }
  0x26   :  { %379 = vmatpush.msra.mxu1 %v316_v61  ;;  %399 = vmatpush.msra.mxu2 %v348_v62  ;;  %v333_v46 = vld [vmem:[#allocation10 + $0x108] sm:$0xff]  ;;  %v266_v47 = vld [vmem:[#allocation9 + $0xf0] sm:$0xff]  ;;  %v267_v49 = vld [vmem:[#allocation9 + $0xf8] sm:$0xff] }
  0x27   :  { %419 = vmatpush.msra.mxu3 %v317_v63  ;;  %439 = vmatpush.msrb.mxu0 %v349_v2  ;;  %v298_v48 = vld [vmem:[#allocation9 + $0x1f0] sm:$0xff]  ;;  %v299_v50 = vld [vmem:[#allocation9 + $0x1f8] sm:$0xff]  ;;  %v264_v51 = vld [vmem:[#allocation9 + $0xe0] sm:$0xff] }
  0x28   :  { %380 = vmatpush.msra.mxu1 %v314_v6  ;;  %400 = vmatpush.msra.mxu2 %v346_v7  ;;  %v296_v52 = vld [vmem:[#allocation9 + $0x1e0] sm:$0xff]  ;;  %v265_v53 = vld [vmem:[#allocation9 + $0xe8] sm:$0xff]  ;;  %v262_v55 = vld [vmem:[#allocation9 + $0xd0] sm:$0xff] }
  0x29   :  { %420 = vmatpush.msra.mxu3 %v315_v9  ;;  %440 = vmatpush.msrb.mxu0 %v347_v10  ;;  %v297_v54 = vld [vmem:[#allocation9 + $0x1e8] sm:$0xff]  ;;  %v294_v56 = vld [vmem:[#allocation9 + $0x1d0] sm:$0xff]  ;;  %v295_v58 = vld [vmem:[#allocation9 + $0x1d8] sm:$0xff] }
  0x2a   :  { %401 = vmatpush.msra.mxu2 %v344_v14  ;;  %v260_v59 = vld [vmem:[#allocation9 + $0xc0] sm:$0xff]  ;;  %v261_v61 = vld [vmem:[#allocation9 + $0xc8] sm:$0xff]  ;;  %v258_v63 = vld [vmem:[#allocation9 + $0xb0] sm:$0xff] }
  0x2b   :  { %v293_v62 = vld [vmem:[#allocation9 + $0x1c8] sm:$0xff]  ;;  %v290_v2 = vld [vmem:[#allocation9 + $0x1b0] sm:$0xff]  ;;  %v291_v6 = vld [vmem:[#allocation9 + $0x1b8] sm:$0xff] }
  0x2c   :  { %v256_v7 = vld [vmem:[#allocation9 + $0xa0] sm:$0xff]  ;;  %v257_v9 = vld [vmem:[#allocation9 + $0xa8] sm:$0xff]  ;;  %v287_v14 = vld [vmem:[#allocation9 + $0x198] sm:$0xff] }
  0x2d   :  { %v289_v10 = vld [vmem:[#allocation9 + $0x1a8] sm:$0xff] }
  0x89   :  { %v93_v13 = vpop.xlane.xlu0 %92 }
  0x8a   :  { %v104_v17 = vmul.f32 %v103_v15, %v93_v13  ;;  %v312_v13 = vld [vmem:[#allocation10 + $0x60] sm:$0xff] }
  0x8b   :  { %381 = vmatpush.msra.mxu1 %v312_v13  ;;  %v255_v13 = vld [vmem:[#allocation9 + $0x98] sm:$0xff] }
  0x8c   :  { %v113_v20 = vperm.slane %v104_v17, %v112_v16 }
  0x91   :  { %v96_v18 = vpop.xlane.xlu0 %95 }
  0x92   :  { %v105_v19 = vmul.f32 %v103_v15, %v96_v18  ;;  %v313_v15 = vld [vmem:[#allocation10 + $0x68] sm:$0xff]  ;;  %v310_v18 = vld [vmem:[#allocation10 + $0x50] sm:$0xff] }
  0x93   :  { %421 = vmatpush.msra.mxu3 %v313_v15  ;;  %382 = vmatpush.msra.mxu1 %v310_v18  ;;  %v252_v15 = vld [vmem:[#allocation9 + $0x80] sm:$0xff]  ;;  %v285_v18 = vld [vmem:[#allocation9 + $0x188] sm:$0xff] }
  0x94   :  { %v114_v21 = vperm.slane %v105_v19, %v112_v16  ;;  %v345_v16 = vld [vmem:[#allocation10 + $0x168] sm:$0xff]  ;;  %v342_v19 = vld [vmem:[#allocation10 + $0x150] sm:$0xff] }
  0x95   :  { %441 = vmatpush.msrb.mxu0 %v345_v16  ;;  %402 = vmatpush.msra.mxu2 %v342_v19  ;;  %v284_v16 = vld [vmem:[#allocation9 + $0x180] sm:$0xff]  ;;  %v250_v19 = vld [vmem:[#allocation9 + $0x70] sm:$0xff] }
  0x96   :  { %v116_v22 = vsel %vm115_vm1, %v114_v21, %v113_v20  ;;  %v311_v21 = vld [vmem:[#allocation10 + $0x58] sm:$0xff] }
  0x97   :  { %626 = vmatmul.msk.f32.vlgmr.msra.gmra.mxu0 %vm117_vm2, %v116_v22  ;;  %v343_v22 = vld [vmem:[#allocation10 + $0x158] sm:$0xff]  ;;  %422 = vmatpush.msra.mxu3 %v311_v21 }
  0x98   :  { %442 = vmatpush.msrb.mxu0 %v343_v22  ;;  %v251_v21 = vld [vmem:[#allocation9 + $0x78] sm:$0xff] }
  0x99   :  { %v283_v22 = vld [vmem:[#allocation9 + $0x178] sm:$0xff] }
  0x9a   :  { %443 = vmatpush.msrb.mxu0 %v341_v29  ;;  %v247_v29 = vld [vmem:[#allocation9 + $0x58] sm:$0xff] }
  0x9c   :  { %444 = vmatpush.msrb.mxu0 %v339_v33  ;;  %v245_v33 = vld [vmem:[#allocation9 + $0x48] sm:$0xff] }
  0x9e   :  { %445 = vmatpush.msrb.mxu0 %v337_v37  ;;  %v243_v37 = vld [vmem:[#allocation9 + $0x38] sm:$0xff] }
  0xa0   :  { %446 = vmatpush.msrb.mxu0 %v335_v41  ;;  %v241_v41 = vld [vmem:[#allocation9 + $0x28] sm:$0xff] }
  0xa2   :  { %447 = vmatpush.msrb.mxu0 %v333_v46  ;;  %v271_v46 = vld [vmem:[#allocation9 + $0x118] sm:$0xff] }
  0xa4   :  { %520 = vmatpush.msra.mxu0 %v299_v50  ;;  %v269_v50 = vld [vmem:[#allocation9 + $0x108] sm:$0xff] }
  0xa6   :  { %521 = vmatpush.msra.mxu0 %v297_v54  ;;  %v789_v54 = vmov 8.0  }
  0xa8   :  { %522 = vmatpush.msra.mxu0 %v295_v58 }
  0xaa   :  { %523 = vmatpush.msra.mxu0 %v293_v62 }
  0xac   :  { %524 = vmatpush.msra.mxu0 %v291_v6 }
  0xae   :  { %525 = vmatpush.msra.mxu0 %v289_v10 }
  0xb0   :  { %526 = vmatpush.msra.mxu0 %v287_v14 }
  0xb2   :  { %527 = vmatpush.msra.mxu0 %v285_v18 }
  0xb4   :  { %528 = vmatpush.msra.mxu0 %v283_v22 }
 0x114   :  { %v137_v25 = vpop.f32.mrf.mxu0 }
 0x115   :  { %v138_v26 = vadd.f32 %v137_v25, %v108_v24  ;;  %v308_v24 = vld [vmem:[#allocation10 + $0x40] sm:$0xff] }
 0x116   :  { %v340_v25 = vld [vmem:[#allocation10 + $0x140] sm:$0xff]  ;;  %383 = vmatpush.msra.mxu1 %v308_v24 }
 0x117   :  { %v140_v27 = vsub.f32 0.0, %v138_v26  ;;  %403 = vmatpush.msra.mxu2 %v340_v25  ;;  %v280_v24 = vld [vmem:[#allocation9 + $0x160] sm:$0xff]  ;;  %v249_v25 = vld [vmem:[#allocation9 + $0x68] sm:$0xff] }
 0x118   :  { %384 = vmatpush.msra.mxu1 %v306_v30  ;;  %v279_v30 = vld [vmem:[#allocation9 + $0x158] sm:$0xff] }
 0x119   :  { %v141_v28 = vmul.f32 1.442695, %v140_v27  ;;  %v309_v27 = vld [vmem:[#allocation10 + $0x48] sm:$0xff]  ;;  %404 = vmatpush.msra.mxu2 %v338_v31  ;;  %v244_v31 = vld [vmem:[#allocation9 + $0x40] sm:$0xff] }
 0x11a   :  { %423 = vmatpush.msra.mxu3 %v309_v27  ;;  %385 = vmatpush.msra.mxu1 %v304_v34  ;;  %v246_v27 = vld [vmem:[#allocation9 + $0x50] sm:$0xff]  ;;  %v277_v34 = vld [vmem:[#allocation9 + $0x148] sm:$0xff] }
 0x11b   :  { %640 = vpow2.f32 %v141_v28 }
 0x11c   :  { %424 = vmatpush.msra.mxu3 %v307_v32  ;;  %386 = vmatpush.msra.mxu1 %v302_v38  ;;  %v276_v32 = vld [vmem:[#allocation9 + $0x140] sm:$0xff]  ;;  %v275_v38 = vld [vmem:[#allocation9 + $0x138] sm:$0xff] }
 0x11e   :  { %425 = vmatpush.msra.mxu3 %v305_v36  ;;  %387 = vmatpush.msra.mxu1 %v300_v42  ;;  %v274_v36 = vld [vmem:[#allocation9 + $0x130] sm:$0xff]  ;;  %v273_v42 = vld [vmem:[#allocation9 + $0x128] sm:$0xff] }
 0x120   :  { %426 = vmatpush.msra.mxu3 %v303_v40  ;;  %460 = vmatpush.msrb.mxu1 %v266_v47  ;;  %v272_v40 = vld [vmem:[#allocation9 + $0x120] sm:$0xff] }
 0x121   :  { %v641_v35 = vpop.eup %640  ;;  %v236_v47 = vld [vmem:[#allocation9] sm:$0xff] }
 0x122   :  { %v863_v39 = vadd.f32 1.0, %v641_v35  ;;  %v336_v35 = vld [vmem:[#allocation10 + $0x120] sm:$0xff]  ;;  %427 = vmatpush.msra.mxu3 %v301_v45  ;;  %461 = vmatpush.msrb.mxu1 %v264_v51  ;;  %v239_v45 = vld [vmem:[#allocation9 + $0x18] sm:$0xff] }
 0x123   :  { %405 = vmatpush.msra.mxu2 %v336_v35  ;;  %v242_v35 = vld [vmem:[#allocation9 + $0x30] sm:$0xff] }
 0x124   :  { %642 = vrcp.f32 %v863_v39  ;;  %v155_v8 = vand.u32 2147483648, %v863_v39  ;;  %v153_v12 = vand.u32 2147483647, %v863_v39  ;;  %vm149_vm4 = vweird.f32 %v863_v39  ;;  %500 = vmatpush.msrb.mxu3 %v267_v49  ;;  %462 = vmatpush.msrb.mxu1 %v262_v55  ;;  %v237_v49 = vld [vmem:[#allocation9 + $0x8] sm:$0xff] }
 0x125   :  { %644 = vrcp.f32 %v789_v54 }
 0x126   :  { %v156_v20 = vor.u32 1.1754944e-38, %v155_v8  ;;  %vm154_vm6 = vcmp.eq.f32.partialorder %v153_v12, 8.507059e+37  ;;  %501 = vmatpush.msrb.mxu3 %v265_v53  ;;  %463 = vmatpush.msrb.mxu1 %v260_v59  ;;  %v288_v8 = vld [vmem:[#allocation9 + $0x1a0] sm:$0xff]  ;;  %v286_v12 = vld [vmem:[#allocation9 + $0x190] sm:$0xff] }
 0x128   :  { %464 = vmatpush.msrb.mxu1 %v258_v63 }
 0x12a   :  { %v643_v57 = vpop.eup %642  ;;  %465 = vmatpush.msrb.mxu1 %v256_v7 }
 0x12b   :  { %v145_v60 = vmul.f32 %v643_v57, %v863_v39  ;;  %vm150_vm3 = vweird.f32 %v643_v57  ;;  %v334_v39 = vld [vmem:[#allocation10 + $0x110] sm:$0xff]  ;;  %v645_v59 = vpop.eup %644 }
 0x12c   :  { %vm151_vm5 = vmor %vm149_vm4, %vm150_vm3  ;;  %406 = vmatpush.msra.mxu2 %v334_v39  ;;  %v240_v39 = vld [vmem:[#allocation9 + $0x20] sm:$0xff]  ;;  %vm206_vm7 = vweird.f32 %v645_v59 }
 0x12d   :  { %v146_v5 = vsub.f32 1.0, %v145_v60  ;;  %v292_v60 = vld [vmem:[#allocation9 + $0x1c0] sm:$0xff] }
 0x12e   :  { %407 = vmatpush.msra.mxu2 %v332_v43  ;;  %v238_v43 = vld [vmem:[#allocation9 + $0x10] sm:$0xff] }
 0x12f   :  { %v147_v11 = vmul.f32 %v643_v57, %v146_v5  ;;  %v259_v5 = vld [vmem:[#allocation9 + $0xb8] sm:$0xff] }
 0x130   :  { %480 = vmatpush.msrb.mxu2 %v298_v48  ;;  %v268_v48 = vld [vmem:[#allocation9 + $0x100] sm:$0xff] }
 0x131   :  { %v148_v17 = vadd.f32 %v643_v57, %v147_v11  ;;  %v254_v11 = vld [vmem:[#allocation9 + $0x90] sm:$0xff] }
 0x132   :  { %481 = vmatpush.msrb.mxu2 %v296_v52  ;;  %466 = vmatpush.msrb.mxu1 %v254_v11 }
 0x133   :  { %v152_v23 = vsel %vm151_vm5, %v643_v57, %v148_v17  ;;  %v263_v57 = vld [vmem:[#allocation9 + $0xd8] sm:$0xff]  ;;  %v253_v17 = vld [vmem:[#allocation9 + $0x88] sm:$0xff] }
 0x134   :  { %v157_v26 = vsel %vm154_vm6, %v156_v20, %v152_v23  ;;  %482 = vmatpush.msrb.mxu2 %v294_v56  ;;  %502 = vmatpush.msrb.mxu3 %v263_v57  ;;  %v282_v20 = vld [vmem:[#allocation9 + $0x170] sm:$0xff]  ;;  %v248_v23 = vld [vmem:[#allocation9 + $0x60] sm:$0xff] }
 0x135   :  { %v159_v28 = vperm.slane %v157_v26, 0  ;;  %v166_v44 = vperm.slane %v157_v26, 1  ;;  %467 = vmatpush.msrb.mxu1 %v252_v15  ;;  %v281_v26 = vld [vmem:[#allocation9 + $0x168] sm:$0xff] }
 0x136   :  { %483 = vmatpush.msrb.mxu2 %v292_v60  ;;  %503 = vmatpush.msrb.mxu3 %v261_v61 }
 0x137   :  { %164 = vperm.xlu1 %636, %v159_v28   ;;  %468 = vmatpush.msrb.mxu1 %v250_v19  ;;  %v278_v28 = vld [vmem:[#allocation9 + $0x150] sm:$0xff] }
 0x138   :  { %484 = vmatpush.msrb.mxu2 %v290_v2  ;;  %504 = vmatpush.msrb.mxu3 %v259_v5  ;;  %v202_v5 = vmul.f32 8.0, %v645_v59 }
 0x139   :  { %469 = vmatpush.msrb.mxu1 %v248_v23  ;;  %529 = vmatpush.msra.mxu0 %v281_v26 }
 0x13a   :  { %485 = vmatpush.msrb.mxu2 %v288_v8  ;;  %505 = vmatpush.msrb.mxu3 %v257_v9  ;;  %v203_v15 = vsub.f32 1.0, %v202_v5 }
 0x13b   :  { %470 = vmatpush.msrb.mxu1 %v246_v27  ;;  %530 = vmatpush.msra.mxu0 %v279_v30 }
 0x13c   :  { %486 = vmatpush.msrb.mxu2 %v286_v12  ;;  %506 = vmatpush.msrb.mxu3 %v255_v13  ;;  %v204_v27 = vmul.f32 %v645_v59, %v203_v15 }
 0x13d   :  { %471 = vmatpush.msrb.mxu1 %v244_v31  ;;  %531 = vmatpush.msra.mxu0 %v277_v34 }
 0x13e   :  { %487 = vmatpush.msrb.mxu2 %v284_v16  ;;  %507 = vmatpush.msrb.mxu3 %v253_v17 }
 0x13f   :  { %171 = vperm.xlu1 %636, %v166_v44   ;;  %472 = vmatpush.msrb.mxu1 %v242_v35  ;;  %v270_v44 = vld [vmem:[#allocation9 + $0x110] sm:$0xff] }
 0x140   :  { %488 = vmatpush.msrb.mxu2 %v282_v20  ;;  %508 = vmatpush.msrb.mxu3 %v251_v21 }
 0x141   :  { %532 = vmatpush.msra.mxu0 %v275_v38  ;;  %473 = vmatpush.msrb.mxu1 %v240_v39  ;;  %v205_v38 = vadd.f32 %v645_v59, %v204_v27 }
 0x142   :  { %489 = vmatpush.msrb.mxu2 %v280_v24  ;;  %509 = vmatpush.msrb.mxu3 %v249_v25 }
 0x143   :  { %533 = vmatpush.msra.mxu0 %v273_v42  ;;  %474 = vmatpush.msrb.mxu1 %v238_v43 }
 0x144   :  { %490 = vmatpush.msrb.mxu2 %v278_v28  ;;  %510 = vmatpush.msrb.mxu3 %v247_v29 }
 0x145   :  { %534 = vmatpush.msra.mxu0 %v271_v46  ;;  %475 = vmatpush.msrb.mxu1 %v236_v47 }
 0x146   :  { %491 = vmatpush.msrb.mxu2 %v276_v32  ;;  %511 = vmatpush.msrb.mxu3 %v245_v33 }
 0x147   :  { %535 = vmatpush.msra.mxu0 %v269_v50 }
 0x148   :  { %492 = vmatpush.msrb.mxu2 %v274_v36  ;;  %512 = vmatpush.msrb.mxu3 %v243_v37 }
 0x14a   :  { %493 = vmatpush.msrb.mxu2 %v272_v40  ;;  %513 = vmatpush.msrb.mxu3 %v241_v41 }
 0x14c   :  { %494 = vmatpush.msrb.mxu2 %v270_v44  ;;  %514 = vmatpush.msrb.mxu3 %v239_v45  ;;  %v207_v45 = vsel %vm206_vm7, %v645_v59, %v205_v38 }
 0x14e   :  { %495 = vmatpush.msrb.mxu2 %v268_v48  ;;  %515 = vmatpush.msrb.mxu3 %v237_v49 }
 0x1a9   :  { %v165_v51 = vpop.permute.xlu1 %164 }
 0x1aa   :  { %v872_v52 = vmul.f32 %v165_v51, %v847_v0  ;;  %v875_v53 = vmul.f32 %v165_v51, %v849_v1 }
 0x1ac   :  { %v177_v55 = vrot.slane %v872_v52, 4  ;;  %v183_v56 = vrot.slane %v875_v53, 4 }
 0x1ae   :  { %v213_v57 = vmax.f32 %v872_v52, %v177_v55  ;;  %v219_v58 = vmax.f32 %v875_v53, %v183_v56  ;;  %v178_v60 = vadd.f32 %v177_v55, %v872_v52  ;;  %v184_v0 = vadd.f32 %v183_v56, %v875_v53 }
 0x1b0   :  { %v214_v1 = vrot.slane %v213_v57, 2  ;;  %v220_v62 = vrot.slane %v219_v58, 2  ;;  %v179_v8 = vrot.slane %v178_v60, 2  ;;  %v185_v9 = vrot.slane %v184_v0, 2 }
 0x1b1   :  { %v172_v61 = vpop.permute.xlu1 %171 }
 0x1b2   :  { %v884_v63 = vmul.f32 %v172_v61, %v853_v3  ;;  %v887_v2 = vmul.f32 %v172_v61, %v855_v4  ;;  %v215_v10 = vmax.f32 %v213_v57, %v214_v1  ;;  %v221_v11 = vmax.f32 %v219_v58, %v220_v62 }
 0x1b3   :  { %v180_v21 = vadd.f32 %v179_v8, %v178_v60  ;;  %v186_v22 = vadd.f32 %v185_v9, %v184_v0  ;;  %v541_v1 = vstv %s918_s5  ;;  %s790_s5 = smov [#allocation12]  }
 0x1b4   :  { %v189_v6 = vrot.slane %v884_v63, 4  ;;  %v195_v7 = vrot.slane %v887_v2, 4  ;;  %v216_v19 = vrot.slane %v215_v10, 1  ;;  %v222_v20 = vrot.slane %v221_v11, 1  ;;  %s609_s18 = sshll.u32 %s790_s5, 4  ;;  %s610_s18 = int_to_ptr.vmem [resolvable:$true] %s609_s18 }
 0x1b5   :  { %v181_v32 = vrot.slane %v180_v21, 1  ;;  %v187_v33 = vrot.slane %v186_v22, 1 }
 0x1b6   :  { %v190_v12 = vadd.f32 %v189_v6, %v884_v63  ;;  %v196_v13 = vadd.f32 %v195_v7, %v887_v2  ;;  %v225_v14 = vmax.f32 %v884_v63, %v189_v6  ;;  %v231_v3 = vmax.f32 %v887_v2, %v195_v7 }
 0x1b7   :  { %v217_v34 = vmax.f32 %v215_v10, %v216_v19  ;;  %v223_v36 = vmax.f32 %v221_v11, %v222_v20  ;;  %v182_v43 = vadd.f32 %v181_v32, %v180_v21  ;;  %v188_v44 = vadd.f32 %v187_v33, %v186_v22 }
 0x1b8   :  { %v191_v4 = vrot.slane %v190_v12, 2  ;;  %v197_v16 = vrot.slane %v196_v13, 2  ;;  %v226_v17 = vrot.slane %v225_v14, 2  ;;  %v232_v18 = vrot.slane %v231_v3, 2 }
 0x1b9   :  { %v208_v48 = vmul.f32 %v207_v45, %v182_v43  ;;  %v209_v49 = vmul.f32 %v207_v45, %v188_v44 }
 0x1ba   :  { %v227_v23 = vmax.f32 %v225_v14, %v226_v17  ;;  %v233_v24 = vmax.f32 %v231_v3, %v232_v18  ;;  %v192_v25 = vadd.f32 %v191_v4, %v190_v12  ;;  %v198_v26 = vadd.f32 %v197_v16, %v196_v13 }
 0x1bc   :  { %v228_v28 = vrot.slane %v227_v23, 1  ;;  %v234_v29 = vrot.slane %v233_v24, 1  ;;  %v193_v30 = vrot.slane %v192_v25, 1  ;;  %v199_v31 = vrot.slane %v198_v26, 1 }
 0x1be   :  { %v229_v35 = vmax.f32 %v227_v23, %v228_v28  ;;  %v235_v37 = vmax.f32 %v233_v24, %v234_v29  ;;  %v194_v41 = vadd.f32 %v193_v30, %v192_v25  ;;  %v200_v42 = vadd.f32 %v199_v31, %v198_v26 }
 0x1c0   :  { %v368_v39 = vsel %vm115_vm1, %v229_v35, %v217_v34  ;;  %v369_v40 = vsel %vm115_vm1, %v235_v37, %v223_v36  ;;  %v210_v46 = vmul.f32 %v207_v45, %v194_v41  ;;  %v211_v47 = vmul.f32 %v207_v45, %v200_v42 }
 0x1c1   :  { %388 = vmatmul.f32.vlgmr.msra.gmra.mxu1 %v368_v39  ;;  %408 = vmatmul.f32.vlgmr.msra.gmra.mxu2 %v369_v40 }
 0x1c2   :  { %428 = vmatmul.f32.vlgmr.msra.gmra.mxu3 %v368_v39  ;;  %448 = vmatmul.f32.vlgmr.msrb.gmra.mxu0 %v369_v40  ;;  %v456_v50 = vsel %vm115_vm1, %v210_v46, %v208_v48  ;;  %v457_v51 = vsel %vm115_vm1, %v211_v47, %v209_v49 }
 0x1c9   :  { %476 = vmatmul.f32.vlgmr.msrb.gmra.mxu1 %v456_v50  ;;  %496 = vmatmul.f32.vlgmr.msrb.gmra.mxu2 %v457_v51 }
 0x1ca   :  { %516 = vmatmul.f32.vlgmr.msrb.gmra.mxu3 %v456_v50  ;;  %536 = vmatmul.f32.vlgmr.msra.gmra.mxu0 %v457_v51 }
 0x23e   :  { %v389_v54 = vpop.f32.mrf.mxu1 }
 0x23f   :  { %v449_v56 = vpop.f32.mrf.mxu0 }
 0x244   :  { %v409_v55 = vpop.f32.mrf.mxu2 }
 0x245   :  { %v429_v57 = vpop.f32.mrf.mxu3  ;;  %v410_v58 = vadd.f32 %v409_v55, %v389_v54 }
 0x246   :  { %v477_v60 = vpop.f32.mrf.mxu1  ;;  %v450_v59 = vadd.f32 %v449_v56, %v429_v57 }
 0x247   :  { %v478_v0 = vadd.f32 %v477_v60, %v410_v58  ;;  %v537_v7 = vpop.f32.mrf.mxu0 }
 0x24c   :  { %v497_v61 = vpop.f32.mrf.mxu2 }
 0x24d   :  { %v498_v62 = vadd.f32 %v497_v61, %v478_v0  ;;  %v517_v5 = vpop.f32.mrf.mxu3 }
 0x24e   :  { %v518_v6 = vadd.f32 %v517_v5, %v450_v59 }
 0x24f   :  { %v542_v8 = vadd.f32 %v541_v1, %v498_v62 }
 0x250   :  { %v538_v9 = vadd.f32 %v537_v7, %v518_v6 }
 0x251   :  { %v544_v10 = vsub.f32 0.0, %v542_v8 }
 0x252   :  { %v543_v11 = vadd.f32 %v541_v1, %v538_v9 }
 0x253   :  { %v546_v12 = vmul.f32 1.442695, %v544_v10 }
 0x254   :  { %v545_v13 = vsub.f32 0.0, %v543_v11 }
 0x255   :  { %646 = vpow2.f32 %v546_v12 }
 0x256   :  { %v548_v14 = vmul.f32 1.442695, %v545_v13 }
 0x258   :  { %648 = vpow2.f32 %v548_v14 }
 0x25b   :  { %v647_v3 = vpop.eup %646 }
 0x25c   :  { %v550_v15 = vadd.f32 1.0, %v647_v3 }
 0x25e   :  { %v649_v4 = vpop.eup %648  ;;  %650 = vrcp.f32 %v550_v15  ;;  %vm557_vm10 = vweird.f32 %v550_v15  ;;  %v563_v28 = vand.u32 2147483648, %v550_v15  ;;  %v561_v29 = vand.u32 2147483647, %v550_v15 }
 0x25f   :  { %v551_v16 = vadd.f32 1.0, %v649_v4 }
 0x260   :  { %v564_v34 = vor.u32 1.1754944e-38, %v563_v28  ;;  %vm562_vm0 = vcmp.eq.f32.partialorder %v561_v29, 8.507059e+37 }
 0x261   :  { %652 = vrcp.f32 %v551_v16  ;;  %v578_v24 = vand.u32 2147483648, %v551_v16  ;;  %v576_v27 = vand.u32 2147483647, %v551_v16  ;;  %vm572_vm12 = vweird.f32 %v551_v16 }
 0x263   :  { %v579_v31 = vor.u32 1.1754944e-38, %v578_v24  ;;  %vm577_vm14 = vcmp.eq.f32.partialorder %v576_v27, 8.507059e+37 }
 0x264   :  { %v651_v17 = vpop.eup %650 }
 0x265   :  { %v553_v18 = vmul.f32 %v651_v17, %v550_v15  ;;  %vm558_vm8 = vweird.f32 %v651_v17 }
 0x266   :  { %vm559_vm11 = vmor %vm557_vm10, %vm558_vm8 }
 0x267   :  { %v653_v19 = vpop.eup %652  ;;  %v554_v20 = vsub.f32 1.0, %v553_v18 }
 0x268   :  { %v568_v21 = vmul.f32 %v653_v19, %v551_v16  ;;  %vm573_vm9 = vweird.f32 %v653_v19 }
 0x269   :  { %v555_v22 = vmul.f32 %v651_v17, %v554_v20  ;;  %vm574_vm13 = vmor %vm572_vm12, %vm573_vm9 }
 0x26a   :  { %v569_v23 = vsub.f32 1.0, %v568_v21 }
 0x26b   :  { %v556_v25 = vadd.f32 %v651_v17, %v555_v22 }
 0x26c   :  { %v570_v26 = vmul.f32 %v653_v19, %v569_v23 }
 0x26d   :  { %v560_v33 = vsel %vm559_vm11, %v651_v17, %v556_v25 }
 0x26e   :  { %v571_v30 = vadd.f32 %v653_v19, %v570_v26  ;;  %v565_v37 = vsel %vm562_vm0, %v564_v34, %v560_v33 }
 0x270   :  { %v575_v32 = vsel %vm574_vm13, %v653_v19, %v571_v30 }
 0x271   :  { %v580_v35 = vsel %vm577_vm14, %v579_v31, %v575_v32 }
 0x272   :  { %v584_v36 = vrot.slane %v580_v35, 7 }
 0x274   :  { %v586_v38 = vsel %vm585_vm15, %v565_v37, %v584_v36  ;;  %v587_v39 = vsel %vm115_vm1, %v565_v37, %v584_v36 }
 0x275   :  { %v588_v40 = vrot.slane %v587_v39, 1  ;;  %v589_v41 = vperm.slane %v586_v38, 0  ;;  %v590_v42 = vperm.slane %v586_v38, 1 }
 0x277   :  { %v591_v43 = vperm.slane %v588_v40, 0  ;;  %v592_v44 = vperm.slane %v588_v40, 1  ;;  %v597_v45 = vmul.f32 %v589_v41, %v872_v52  ;;  %v598_v46 = vmul.f32 %v590_v42, %v875_v53 }
 0x279   :  { %v599_v47 = vmul.f32 %v591_v43, %v884_v63  ;;  %v600_v48 = vmul.f32 %v592_v44, %v887_v2  ;;  %601 = vst [vmem:[#allocation12] sm:$0xff] %v597_v45 }
 0x27a   :  { %602 = vst [vmem:[#allocation12 + $0x8] sm:$0xff] %v598_v46 }
 0x27b   :  { %603 = vst [vmem:[#allocation12 + $0x10] sm:$0xff] %v599_v47 }
 0x27c   :  { %604 = vst [vmem:[#allocation12 + $0x18] sm:$0xff] %v600_v48 }
 0x27d   :  { %617 = dma.vmem_to_hbm [thread:$0]  %s610_s18, 512, %s612_s21, [#allocation6], %s784_s7, %s784_s7, %s785_s8  }
 0x27e   :  { %780 = dma.done.wait [#allocation6], 512  }
 0x27f   :  { %781 = vsyncadd [#allocation6], 4294966784 }
 0x280   :  { %622 = vsyncpa [#allocation5], 1 }
 0x281   :  { %623 = vsyncpa [#allocation8], 1 }
 0x282   :  { %624 = vsyncpa [#allocation11], 1 }
 0x283   :  { %625 = vsyncpa [#allocation6], 1 }

// kernel: tpu_custom_call.1
= control target key start
LH: loop header
LB: loop body
LE: loop exit
PB: predicated region body
PF: predicated region fallthrough
CT: control target
= control target key end

     0   :  { %13 = vsyncpa [#allocation5], 0  ;;  %s913_s0 = inlined_call_operand.hbm [shape: f32[2,8,256], index: 0, kind: input, shape index: {}]   ;;  %s914_s1 = inlined_call_operand.hbm [shape: f32[8,8], index: 1, kind: input, shape index: {}]   ;;  %s915_s2 = inlined_call_operand.hbm [shape: f32[256,256], index: 2, kind: input, shape index: {}]   ;;  %s916_s3 = inlined_call_operand.hbm [shape: f32[256,256], index: 3, kind: input, shape index: {}]   ;;  %s917_s4 = inlined_call_operand.<no memory space> [shape: f32[1], index: 4, kind: input, shape index: {}]   ;;  %s918_s5 = inlined_call_operand.<no memory space> [shape: f32[1], index: 5, kind: input, shape index: {}]   ;;  %s919_s6 = inlined_call_operand.hbm [shape: f32[2,8,256], index: 6, kind: output, shape index: {}]  }
   0x1   :  { %14 = vsyncpa [#allocation8], 0 }
   0x2   :  { %15 = vsyncpa [#allocation11], 0  ;;  %s35_s23 = sshll.u32 %s914_s1, 4  ;;  %s36_s23 = int_to_ptr.hbm [resolvable:$true] %s35_s23 }
   0x3   :  { %16 = vsyncpa [#allocation6], 0  ;;  %s782_s24 = smov [#allocation7]   ;;  %s21_s28 = sshll.u32 %s913_s0, 4  ;;  %s22_s28 = int_to_ptr.hbm [resolvable:$true] %s21_s28 }
   0x4   :  { %s37_s25 = sshll.u32 %s782_s24, 4  ;;  %s783_s29 = smov [#allocation4]   ;;  %s38_s25 = int_to_ptr.vmem [resolvable:$true] %s37_s25 }
   0x5   :  { %40 = dma.hbm_to_vmem [thread:$0]  %s36_s23, 128, %s38_s25, [#allocation8]  }
   0x6   :  { %s23_s30 = sshll.u32 %s783_s29, 4  ;;  %s784_s7 = smov 256   ;;  %s24_s30 = int_to_ptr.vmem [resolvable:$true] %s23_s30 }
   0x7   :  { %s785_s8 = smov 16   ;;  %s45_s10 = sshll.u32 %s915_s2, 4  ;;  %s46_s10 = int_to_ptr.hbm [resolvable:$true] %s45_s10 }
   0x8   :  { %29 = dma.hbm_to_vmem [thread:$0]  %s22_s28, 512, %s24_s30, [#allocation5], %s784_s7, %s784_s7, %s785_s8  }
   0x9   :  { %s786_s11 = smov [#allocation9]   ;;  %s58_s14 = sshll.u32 %s916_s3, 4  ;;  %s59_s14 = int_to_ptr.hbm [resolvable:$true] %s58_s14 }
   0xa   :  { %s47_s12 = sshll.u32 %s786_s11, 4  ;;  %s787_s15 = smov [#allocation10]   ;;  %s48_s12 = int_to_ptr.vmem [resolvable:$true] %s47_s12 }
   0xb   :  { %53 = dma.hbm_to_vmem [thread:$0]  %s46_s10, 8192, %s48_s12, [#allocation8], %s784_s7, %s784_s7, %s785_s8  }
   0xc   :  { %s60_s16 = sshll.u32 %s787_s15, 4  ;;  %s61_s16 = int_to_ptr.vmem [resolvable:$true] %s60_s16 }
   0xd   :  { %66 = dma.hbm_to_vmem [thread:$0]  %s59_s14, 8192, %s61_s16, [#allocation11], %s784_s7, %s784_s7, %s785_s8  }
   0xe   :  { %774 = dma.done.wait [#allocation5], 512  }
   0xf   :  { %775 = vsyncadd [#allocation5], 4294966784 }
  0x10   :  { %776 = dma.done.wait [#allocation8], 8320  }
  0x11   :  { %777 = vsyncadd [#allocation8], 4294958976 }
  0x12   :  { %778 = dma.done.wait [#allocation11], 8192  }
  0x13   :  { %779 = vsyncadd [#allocation11], 4294959104  ;;  %v847_v0 = vld [vmem:[#allocation4] sm:$0xff]  ;;  %v849_v1 = vld [vmem:[#allocation4 + $0x8] sm:$0xff]  ;;  %v788_v6 = vmov 256.0   ;;  %v111_v14 = vlaneseq  ;;  %vm115_vm1 = vcmask 1041409   ;;  %v108_v24 = vstv %s917_s4 }
  0x14   :  { %v91_v2 = vadd.f32 %v849_v1, %v847_v0  ;;  %v853_v3 = vld [vmem:[#allocation4 + $0x10] sm:$0xff]  ;;  %v855_v4 = vld [vmem:[#allocation4 + $0x18] sm:$0xff]  ;;  %638 = vrcp.f32 %v788_v6  ;;  %v106_v7 = vld [vmem:[#allocation7] sm:$0xff]  ;;  %vm117_vm2 = vcmask 64512   ;;  %vm585_vm15 = vcmask 1040384   ;;  %s611_s21 = sshll.u32 %s919_s6, 4  ;;  %s612_s21 = int_to_ptr.hbm [resolvable:$true] %s611_s21 }
  0x15   :  { %v94_v5 = vadd.f32 %v855_v4, %v853_v3  ;;  %135 = vmatpush.msra.mxu0 %v106_v7  ;;  %v112_v16 = vand.u32 127, %v111_v14  ;;  %v161_v23 = vshrl.u32 %v111_v14, 7  ;;  %v330_v29 = vld [vmem:[#allocation10 + $0xf0] sm:$0xff]  ;;  %v331_v31 = vld [vmem:[#allocation10 + $0xf8] sm:$0xff]  ;;  %v328_v33 = vld [vmem:[#allocation10 + $0xe0] sm:$0xff] }
  0x16   :  { %92 = vadd.xlane.f32.xlu0 %v91_v2  ;;  %v362_v30 = vld [vmem:[#allocation10 + $0x1f0] sm:$0xff]  ;;  %372 = vmatpush.msra.mxu1 %v330_v29  ;;  %v363_v32 = vld [vmem:[#allocation10 + $0x1f8] sm:$0xff]  ;;  %v360_v34 = vld [vmem:[#allocation10 + $0x1e0] sm:$0xff] }
  0x17   :  { %636 = vset.pattern.permute.xlu1 %v161_v23  ;;  %637 = vset.pattern.permute.xlu0 %v161_v23  ;;  %v329_v36 = vld [vmem:[#allocation10 + $0xe8] sm:$0xff]  ;;  %v326_v38 = vld [vmem:[#allocation10 + $0xd0] sm:$0xff]  ;;  %v327_v41 = vld [vmem:[#allocation10 + $0xd8] sm:$0xff] }
  0x18   :  { %392 = vmatpush.msra.mxu2 %v362_v30  ;;  %412 = vmatpush.msra.mxu3 %v331_v31  ;;  %v361_v37 = vld [vmem:[#allocation10 + $0x1e8] sm:$0xff]  ;;  %v358_v40 = vld [vmem:[#allocation10 + $0x1d0] sm:$0xff]  ;;  %v359_v42 = vld [vmem:[#allocation10 + $0x1d8] sm:$0xff] }
  0x19   :  { %432 = vmatpush.msrb.mxu0 %v363_v32  ;;  %373 = vmatpush.msra.mxu1 %v328_v33  ;;  %v324_v43 = vld [vmem:[#allocation10 + $0xc0] sm:$0xff]  ;;  %v325_v45 = vld [vmem:[#allocation10 + $0xc8] sm:$0xff]  ;;  %v322_v47 = vld [vmem:[#allocation10 + $0xb0] sm:$0xff] }
  0x1a   :  { %v639_v8 = vpop.eup %638  ;;  %393 = vmatpush.msra.mxu2 %v360_v34  ;;  %413 = vmatpush.msra.mxu3 %v329_v36  ;;  %v356_v44 = vld [vmem:[#allocation10 + $0x1c0] sm:$0xff]  ;;  %v357_v46 = vld [vmem:[#allocation10 + $0x1c8] sm:$0xff]  ;;  %v354_v48 = vld [vmem:[#allocation10 + $0x1b0] sm:$0xff] }
  0x1b   :  { %v98_v9 = vmul.f32 256.0, %v639_v8  ;;  %vm102_vm0 = vweird.f32 %v639_v8  ;;  %433 = vmatpush.msrb.mxu0 %v361_v37  ;;  %374 = vmatpush.msra.mxu1 %v326_v38  ;;  %v323_v49 = vld [vmem:[#allocation10 + $0xb8] sm:$0xff]  ;;  %v320_v51 = vld [vmem:[#allocation10 + $0xa0] sm:$0xff]  ;;  %v321_v53 = vld [vmem:[#allocation10 + $0xa8] sm:$0xff] }
  0x1c   :  { %394 = vmatpush.msra.mxu2 %v358_v40  ;;  %414 = vmatpush.msra.mxu3 %v327_v41  ;;  %v355_v50 = vld [vmem:[#allocation10 + $0x1b8] sm:$0xff]  ;;  %v352_v52 = vld [vmem:[#allocation10 + $0x1a0] sm:$0xff]  ;;  %v353_v54 = vld [vmem:[#allocation10 + $0x1a8] sm:$0xff] }
  0x1d   :  { %v99_v10 = vsub.f32 1.0, %v98_v9  ;;  %434 = vmatpush.msrb.mxu0 %v359_v42  ;;  %375 = vmatpush.msra.mxu1 %v324_v43  ;;  %v318_v55 = vld [vmem:[#allocation10 + $0x90] sm:$0xff]  ;;  %v319_v58 = vld [vmem:[#allocation10 + $0x98] sm:$0xff]  ;;  %v316_v61 = vld [vmem:[#allocation10 + $0x80] sm:$0xff] }
  0x1e   :  { %95 = vadd.xlane.f32.xlu0 %v94_v5  ;;  %395 = vmatpush.msra.mxu2 %v356_v44  ;;  %v350_v56 = vld [vmem:[#allocation10 + $0x190] sm:$0xff]  ;;  %v351_v59 = vld [vmem:[#allocation10 + $0x198] sm:$0xff]  ;;  %v348_v62 = vld [vmem:[#allocation10 + $0x180] sm:$0xff] }
  0x1f   :  { %v100_v11 = vmul.f32 %v639_v8, %v99_v10  ;;  %415 = vmatpush.msra.mxu3 %v325_v45  ;;  %435 = vmatpush.msrb.mxu0 %v357_v46  ;;  %v317_v63 = vld [vmem:[#allocation10 + $0x88] sm:$0xff]  ;;  %v314_v6 = vld [vmem:[#allocation10 + $0x70] sm:$0xff]  ;;  %v315_v9 = vld [vmem:[#allocation10 + $0x78] sm:$0xff] }
  0x20   :  { %376 = vmatpush.msra.mxu1 %v322_v47  ;;  %396 = vmatpush.msra.mxu2 %v354_v48  ;;  %v349_v2 = vld [vmem:[#allocation10 + $0x188] sm:$0xff]  ;;  %v346_v7 = vld [vmem:[#allocation10 + $0x170] sm:$0xff]  ;;  %v347_v10 = vld [vmem:[#allocation10 + $0x178] sm:$0xff] }
  0x21   :  { %v101_v12 = vadd.f32 %v639_v8, %v100_v11  ;;  %416 = vmatpush.msra.mxu3 %v323_v49  ;;  %436 = vmatpush.msrb.mxu0 %v355_v50  ;;  %v344_v14 = vld [vmem:[#allocation10 + $0x160] sm:$0xff]  ;;  %v341_v29 = vld [vmem:[#allocation10 + $0x148] sm:$0xff]  ;;  %v306_v30 = vld [vmem:[#allocation10 + $0x30] sm:$0xff] }
  0x22   :  { %377 = vmatpush.msra.mxu1 %v320_v51  ;;  %397 = vmatpush.msra.mxu2 %v352_v52  ;;  %v338_v31 = vld [vmem:[#allocation10 + $0x130] sm:$0xff]  ;;  %v307_v32 = vld [vmem:[#allocation10 + $0x38] sm:$0xff]  ;;  %v304_v34 = vld [vmem:[#allocation10 + $0x20] sm:$0xff] }
  0x23   :  { %v103_v15 = vsel %vm102_vm0, %v639_v8, %v101_v12  ;;  %417 = vmatpush.msra.mxu3 %v321_v53  ;;  %437 = vmatpush.msrb.mxu0 %v353_v54  ;;  %v339_v33 = vld [vmem:[#allocation10 + $0x138] sm:$0xff]  ;;  %v305_v36 = vld [vmem:[#allocation10 + $0x28] sm:$0xff]  ;;  %v302_v38 = vld [vmem:[#allocation10 + $0x10] sm:$0xff] }
  0x24   :  { %378 = vmatpush.msra.mxu1 %v318_v55  ;;  %398 = vmatpush.msra.mxu2 %v350_v56  ;;  %v337_v37 = vld [vmem:[#allocation10 + $0x128] sm:$0xff]  ;;  %v303_v40 = vld [vmem:[#allocation10 + $0x18] sm:$0xff]  ;;  %v300_v42 = vld [vmem:[#allocation10] sm:$0xff] }
  0x25   :  { %418 = vmatpush.msra.mxu3 %v319_v58  ;;  %438 = vmatpush.msrb.mxu0 %v351_v59  ;;  %v335_v41 = vld [vmem:[#allocation10 + $0x118] sm:$0xff]  ;;  %v332_v43 = vld [vmem:[#allocation10 + $0x100] sm:$0xff]  ;;  %v301_v45 = vld [vmem:[#allocation10 + $0x8] sm:$0xff] }
  0x26   :  { %379 = vmatpush.msra.mxu1 %v316_v61  ;;  %399 = vmatpush.msra.mxu2 %v348_v62  ;;  %v333_v46 = vld [vmem:[#allocation10 + $0x108] sm:$0xff]  ;;  %v266_v47 = vld [vmem:[#allocation9 + $0xf0] sm:$0xff]  ;;  %v267_v49 = vld [vmem:[#allocation9 + $0xf8] sm:$0xff] }
  0x27   :  { %419 = vmatpush.msra.mxu3 %v317_v63  ;;  %439 = vmatpush.msrb.mxu0 %v349_v2  ;;  %v298_v48 = vld [vmem:[#allocation9 + $0x1f0] sm:$0xff]  ;;  %v299_v50 = vld [vmem:[#allocation9 + $0x1f8] sm:$0xff]  ;;  %v264_v51 = vld [vmem:[#allocation9 + $0xe0] sm:$0xff] }
  0x28   :  { %380 = vmatpush.msra.mxu1 %v314_v6  ;;  %400 = vmatpush.msra.mxu2 %v346_v7  ;;  %v296_v52 = vld [vmem:[#allocation9 + $0x1e0] sm:$0xff]  ;;  %v265_v53 = vld [vmem:[#allocation9 + $0xe8] sm:$0xff]  ;;  %v262_v55 = vld [vmem:[#allocation9 + $0xd0] sm:$0xff] }
  0x29   :  { %420 = vmatpush.msra.mxu3 %v315_v9  ;;  %440 = vmatpush.msrb.mxu0 %v347_v10  ;;  %v297_v54 = vld [vmem:[#allocation9 + $0x1e8] sm:$0xff]  ;;  %v294_v56 = vld [vmem:[#allocation9 + $0x1d0] sm:$0xff]  ;;  %v295_v58 = vld [vmem:[#allocation9 + $0x1d8] sm:$0xff] }
  0x2a   :  { %401 = vmatpush.msra.mxu2 %v344_v14  ;;  %v260_v59 = vld [vmem:[#allocation9 + $0xc0] sm:$0xff]  ;;  %v261_v61 = vld [vmem:[#allocation9 + $0xc8] sm:$0xff]  ;;  %v258_v63 = vld [vmem:[#allocation9 + $0xb0] sm:$0xff] }
  0x2b   :  { %v293_v62 = vld [vmem:[#allocation9 + $0x1c8] sm:$0xff]  ;;  %v290_v2 = vld [vmem:[#allocation9 + $0x1b0] sm:$0xff]  ;;  %v291_v6 = vld [vmem:[#allocation9 + $0x1b8] sm:$0xff] }
  0x2c   :  { %v256_v7 = vld [vmem:[#allocation9 + $0xa0] sm:$0xff]  ;;  %v257_v9 = vld [vmem:[#allocation9 + $0xa8] sm:$0xff]  ;;  %v287_v14 = vld [vmem:[#allocation9 + $0x198] sm:$0xff] }
  0x2d   :  { %v289_v10 = vld [vmem:[#allocation9 + $0x1a8] sm:$0xff] }
  0x89   :  { %v93_v13 = vpop.xlane.xlu0 %92 }
  0x8a   :  { %v104_v17 = vmul.f32 %v103_v15, %v93_v13  ;;  %v312_v13 = vld [vmem:[#allocation10 + $0x60] sm:$0xff] }
  0x8b   :  { %381 = vmatpush.msra.mxu1 %v312_v13  ;;  %v255_v13 = vld [vmem:[#allocation9 + $0x98] sm:$0xff] }
  0x8c   :  { %v113_v20 = vperm.slane %v104_v17, %v112_v16 }
  0x91   :  { %v96_v18 = vpop.xlane.xlu0 %95 }
  0x92   :  { %v105_v19 = vmul.f32 %v103_v15, %v96_v18  ;;  %v313_v15 = vld [vmem:[#allocation10 + $0x68] sm:$0xff]  ;;  %v310_v18 = vld [vmem:[#allocation10 + $0x50] sm:$0xff] }
  0x93   :  { %421 = vmatpush.msra.mxu3 %v313_v15  ;;  %382 = vmatpush.msra.mxu1 %v310_v18  ;;  %v252_v15 = vld [vmem:[#allocation9 + $0x80] sm:$0xff]  ;;  %v285_v18 = vld [vmem:[#allocation9 + $0x188] sm:$0xff] }
  0x94   :  { %v114_v21 = vperm.slane %v105_v19, %v112_v16  ;;  %v345_v16 = vld [vmem:[#allocation10 + $0x168] sm:$0xff]  ;;  %v342_v19 = vld [vmem:[#allocation10 + $0x150] sm:$0xff] }
  0x95   :  { %441 = vmatpush.msrb.mxu0 %v345_v16  ;;  %402 = vmatpush.msra.mxu2 %v342_v19  ;;  %v284_v16 = vld [vmem:[#allocation9 + $0x180] sm:$0xff]  ;;  %v250_v19 = vld [vmem:[#allocation9 + $0x70] sm:$0xff] }
  0x96   :  { %v116_v22 = vsel %vm115_vm1, %v114_v21, %v113_v20  ;;  %v311_v21 = vld [vmem:[#allocation10 + $0x58] sm:$0xff] }
  0x97   :  { %626 = vmatmul.msk.f32.vlgmr.msra.gmra.mxu0 %vm117_vm2, %v116_v22  ;;  %v343_v22 = vld [vmem:[#allocation10 + $0x158] sm:$0xff]  ;;  %422 = vmatpush.msra.mxu3 %v311_v21 }
  0x98   :  { %442 = vmatpush.msrb.mxu0 %v343_v22  ;;  %v251_v21 = vld [vmem:[#allocation9 + $0x78] sm:$0xff] }
  0x99   :  { %v283_v22 = vld [vmem:[#allocation9 + $0x178] sm:$0xff] }
  0x9a   :  { %443 = vmatpush.msrb.mxu0 %v341_v29  ;;  %v247_v29 = vld [vmem:[#allocation9 + $0x58] sm:$0xff] }
  0x9c   :  { %444 = vmatpush.msrb.mxu0 %v339_v33  ;;  %v245_v33 = vld [vmem:[#allocation9 + $0x48] sm:$0xff] }
  0x9e   :  { %445 = vmatpush.msrb.mxu0 %v337_v37  ;;  %v243_v37 = vld [vmem:[#allocation9 + $0x38] sm:$0xff] }
  0xa0   :  { %446 = vmatpush.msrb.mxu0 %v335_v41  ;;  %v241_v41 = vld [vmem:[#allocation9 + $0x28] sm:$0xff] }
  0xa2   :  { %447 = vmatpush.msrb.mxu0 %v333_v46  ;;  %v271_v46 = vld [vmem:[#allocation9 + $0x118] sm:$0xff] }
  0xa4   :  { %520 = vmatpush.msra.mxu0 %v299_v50  ;;  %v269_v50 = vld [vmem:[#allocation9 + $0x108] sm:$0xff] }
  0xa6   :  { %521 = vmatpush.msra.mxu0 %v297_v54  ;;  %v789_v54 = vmov 8.0  }
  0xa8   :  { %522 = vmatpush.msra.mxu0 %v295_v58 }
  0xaa   :  { %523 = vmatpush.msra.mxu0 %v293_v62 }
  0xac   :  { %524 = vmatpush.msra.mxu0 %v291_v6 }
  0xae   :  { %525 = vmatpush.msra.mxu0 %v289_v10 }
  0xb0   :  { %526 = vmatpush.msra.mxu0 %v287_v14 }
  0xb2   :  { %527 = vmatpush.msra.mxu0 %v285_v18 }
  0xb4   :  { %528 = vmatpush.msra.mxu0 %v283_v22 }
 0x114   :  { %v137_v25 = vpop.f32.mrf.mxu0 }
 0x115   :  { %v138_v26 = vadd.f32 %v137_v25, %v108_v24  ;;  %v308_v24 = vld [vmem:[#allocation10 + $0x40] sm:$0xff] }
 0x116   :  { %v340_v25 = vld [vmem:[#allocation10 + $0x140] sm:$0xff]  ;;  %383 = vmatpush.msra.mxu1 %v308_v24 }
 0x117   :  { %v140_v27 = vsub.f32 0.0, %v138_v26  ;;  %403 = vmatpush.msra.mxu2 %v340_v25  ;;  %v280_v24 = vld [vmem:[#allocation9 + $0x160] sm:$0xff]  ;;  %v249_v25 = vld [vmem:[#allocation9 + $0x68] sm:$0xff] }
 0x118   :  { %384 = vmatpush.msra.mxu1 %v306_v30  ;;  %v279_v30 = vld [vmem:[#allocation9 + $0x158] sm:$0xff] }
 0x119   :  { %v141_v28 = vmul.f32 1.442695, %v140_v27  ;;  %v309_v27 = vld [vmem:[#allocation10 + $0x48] sm:$0xff]  ;;  %404 = vmatpush.msra.mxu2 %v338_v31  ;;  %v244_v31 = vld [vmem:[#allocation9 + $0x40] sm:$0xff] }
 0x11a   :  { %423 = vmatpush.msra.mxu3 %v309_v27  ;;  %385 = vmatpush.msra.mxu1 %v304_v34  ;;  %v246_v27 = vld [vmem:[#allocation9 + $0x50] sm:$0xff]  ;;  %v277_v34 = vld [vmem:[#allocation9 + $0x148] sm:$0xff] }
 0x11b   :  { %640 = vpow2.f32 %v141_v28 }
 0x11c   :  { %424 = vmatpush.msra.mxu3 %v307_v32  ;;  %386 = vmatpush.msra.mxu1 %v302_v38  ;;  %v276_v32 = vld [vmem:[#allocation9 + $0x140] sm:$0xff]  ;;  %v275_v38 = vld [vmem:[#allocation9 + $0x138] sm:$0xff] }
 0x11e   :  { %425 = vmatpush.msra.mxu3 %v305_v36  ;;  %387 = vmatpush.msra.mxu1 %v300_v42  ;;  %v274_v36 = vld [vmem:[#allocation9 + $0x130] sm:$0xff]  ;;  %v273_v42 = vld [vmem:[#allocation9 + $0x128] sm:$0xff] }
 0x120   :  { %426 = vmatpush.msra.mxu3 %v303_v40  ;;  %460 = vmatpush.msrb.mxu1 %v266_v47  ;;  %v272_v40 = vld [vmem:[#allocation9 + $0x120] sm:$0xff] }
 0x121   :  { %v641_v35 = vpop.eup %640  ;;  %v236_v47 = vld [vmem:[#allocation9] sm:$0xff] }
 0x122   :  { %v863_v39 = vadd.f32 1.0, %v641_v35  ;;  %v336_v35 = vld [vmem:[#allocation10 + $0x120] sm:$0xff]  ;;  %427 = vmatpush.msra.mxu3 %v301_v45  ;;  %461 = vmatpush.msrb.mxu1 %v264_v51  ;;  %v239_v45 = vld [vmem:[#allocation9 + $0x18] sm:$0xff] }
 0x123   :  { %405 = vmatpush.msra.mxu2 %v336_v35  ;;  %v242_v35 = vld [vmem:[#allocation9 + $0x30] sm:$0xff] }
 0x124   :  { %642 = vrcp.f32 %v863_v39  ;;  %v155_v8 = vand.u32 2147483648, %v863_v39  ;;  %v153_v12 = vand.u32 2147483647, %v863_v39  ;;  %vm149_vm4 = vweird.f32 %v863_v39  ;;  %500 = vmatpush.msrb.mxu3 %v267_v49  ;;  %462 = vmatpush.msrb.mxu1 %v262_v55  ;;  %v237_v49 = vld [vmem:[#allocation9 + $0x8] sm:$0xff] }
 0x125   :  { %644 = vrcp.f32 %v789_v54 }
 0x126   :  { %v156_v20 = vor.u32 1.1754944e-38, %v155_v8  ;;  %vm154_vm6 = vcmp.eq.f32.partialorder %v153_v12, 8.507059e+37  ;;  %501 = vmatpush.msrb.mxu3 %v265_v53  ;;  %463 = vmatpush.msrb.mxu1 %v260_v59  ;;  %v288_v8 = vld [vmem:[#allocation9 + $0x1a0] sm:$0xff]  ;;  %v286_v12 = vld [vmem:[#allocation9 + $0x190] sm:$0xff] }
 0x128   :  { %464 = vmatpush.msrb.mxu1 %v258_v63 }
 0x12a   :  { %v643_v57 = vpop.eup %642  ;;  %465 = vmatpush.msrb.mxu1 %v256_v7 }
 0x12b   :  { %v145_v60 = vmul.f32 %v643_v57, %v863_v39  ;;  %vm150_vm3 = vweird.f32 %v643_v57  ;;  %v334_v39 = vld [vmem:[#allocation10 + $0x110] sm:$0xff]  ;;  %v645_v59 = vpop.eup %644 }
 0x12c   :  { %vm151_vm5 = vmor %vm149_vm4, %vm150_vm3  ;;  %406 = vmatpush.msra.mxu2 %v334_v39  ;;  %v240_v39 = vld [vmem:[#allocation9 + $0x20] sm:$0xff]  ;;  %vm206_vm7 = vweird.f32 %v645_v59 }
 0x12d   :  { %v146_v5 = vsub.f32 1.0, %v145_v60  ;;  %v292_v60 = vld [vmem:[#allocation9 + $0x1c0] sm:$0xff] }
 0x12e   :  { %407 = vmatpush.msra.mxu2 %v332_v43  ;;  %v238_v43 = vld [vmem:[#allocation9 + $0x10] sm:$0xff] }
 0x12f   :  { %v147_v11 = vmul.f32 %v643_v57, %v146_v5  ;;  %v259_v5 = vld [vmem:[#allocation9 + $0xb8] sm:$0xff] }
 0x130   :  { %480 = vmatpush.msrb.mxu2 %v298_v48  ;;  %v268_v48 = vld [vmem:[#allocation9 + $0x100] sm:$0xff] }
 0x131   :  { %v148_v17 = vadd.f32 %v643_v57, %v147_v11  ;;  %v254_v11 = vld [vmem:[#allocation9 + $0x90] sm:$0xff] }
 0x132   :  { %481 = vmatpush.msrb.mxu2 %v296_v52  ;;  %466 = vmatpush.msrb.mxu1 %v254_v11 }
 0x133   :  { %v152_v23 = vsel %vm151_vm5, %v643_v57, %v148_v17  ;;  %v263_v57 = vld [vmem:[#allocation9 + $0xd8] sm:$0xff]  ;;  %v253_v17 = vld [vmem:[#allocation9 + $0x88] sm:$0xff] }
 0x134   :  { %v157_v26 = vsel %vm154_vm6, %v156_v20, %v152_v23  ;;  %482 = vmatpush.msrb.mxu2 %v294_v56  ;;  %502 = vmatpush.msrb.mxu3 %v263_v57  ;;  %v282_v20 = vld [vmem:[#allocation9 + $0x170] sm:$0xff]  ;;  %v248_v23 = vld [vmem:[#allocation9 + $0x60] sm:$0xff] }
 0x135   :  { %v159_v28 = vperm.slane %v157_v26, 0  ;;  %v166_v44 = vperm.slane %v157_v26, 1  ;;  %467 = vmatpush.msrb.mxu1 %v252_v15  ;;  %v281_v26 = vld [vmem:[#allocation9 + $0x168] sm:$0xff] }
 0x136   :  { %483 = vmatpush.msrb.mxu2 %v292_v60  ;;  %503 = vmatpush.msrb.mxu3 %v261_v61 }
 0x137   :  { %164 = vperm.xlu1 %636, %v159_v28   ;;  %468 = vmatpush.msrb.mxu1 %v250_v19  ;;  %v278_v28 = vld [vmem:[#allocation9 + $0x150] sm:$0xff] }
 0x138   :  { %484 = vmatpush.msrb.mxu2 %v290_v2  ;;  %504 = vmatpush.msrb.mxu3 %v259_v5  ;;  %v202_v5 = vmul.f32 8.0, %v645_v59 }
 0x139   :  { %469 = vmatpush.msrb.mxu1 %v248_v23  ;;  %529 = vmatpush.msra.mxu0 %v281_v26 }
 0x13a   :  { %485 = vmatpush.msrb.mxu2 %v288_v8  ;;  %505 = vmatpush.msrb.mxu3 %v257_v9  ;;  %v203_v15 = vsub.f32 1.0, %v202_v5 }
 0x13b   :  { %470 = vmatpush.msrb.mxu1 %v246_v27  ;;  %530 = vmatpush.msra.mxu0 %v279_v30 }
 0x13c   :  { %486 = vmatpush.msrb.mxu2 %v286_v12  ;;  %506 = vmatpush.msrb.mxu3 %v255_v13  ;;  %v204_v27 = vmul.f32 %v645_v59, %v203_v15 }
 0x13d   :  { %471 = vmatpush.msrb.mxu1 %v244_v31  ;;  %531 = vmatpush.msra.mxu0 %v277_v34 }
 0x13e   :  { %487 = vmatpush.msrb.mxu2 %v284_v16  ;;  %507 = vmatpush.msrb.mxu3 %v253_v17 }
 0x13f   :  { %171 = vperm.xlu1 %636, %v166_v44   ;;  %472 = vmatpush.msrb.mxu1 %v242_v35  ;;  %v270_v44 = vld [vmem:[#allocation9 + $0x110] sm:$0xff] }
 0x140   :  { %488 = vmatpush.msrb.mxu2 %v282_v20  ;;  %508 = vmatpush.msrb.mxu3 %v251_v21 }
 0x141   :  { %532 = vmatpush.msra.mxu0 %v275_v38  ;;  %473 = vmatpush.msrb.mxu1 %v240_v39  ;;  %v205_v38 = vadd.f32 %v645_v59, %v204_v27 }
 0x142   :  { %489 = vmatpush.msrb.mxu2 %v280_v24  ;;  %509 = vmatpush.msrb.mxu3 %v249_v25 }
 0x143   :  { %533 = vmatpush.msra.mxu0 %v273_v42  ;;  %474 = vmatpush.msrb.mxu1 %v238_v43 }
 0x144   :  { %490 = vmatpush.msrb.mxu2 %v278_v28  ;;  %510 = vmatpush.msrb.mxu3 %v247_v29 }
 0x145   :  { %534 = vmatpush.msra.mxu0 %v271_v46  ;;  %475 = vmatpush.msrb.mxu1 %v236_v47 }
 0x146   :  { %491 = vmatpush.msrb.mxu2 %v276_v32  ;;  %511 = vmatpush.msrb.mxu3 %v245_v33 }
 0x147   :  { %535 = vmatpush.msra.mxu0 %v269_v50 }
 0x148   :  { %492 = vmatpush.msrb.mxu2 %v274_v36  ;;  %512 = vmatpush.msrb.mxu3 %v243_v37 }
 0x14a   :  { %493 = vmatpush.msrb.mxu2 %v272_v40  ;;  %513 = vmatpush.msrb.mxu3 %v241_v41 }
 0x14c   :  { %494 = vmatpush.msrb.mxu2 %v270_v44  ;;  %514 = vmatpush.msrb.mxu3 %v239_v45  ;;  %v207_v45 = vsel %vm206_vm7, %v645_v59, %v205_v38 }
 0x14e   :  { %495 = vmatpush.msrb.mxu2 %v268_v48  ;;  %515 = vmatpush.msrb.mxu3 %v237_v49 }
 0x1a9   :  { %v165_v51 = vpop.permute.xlu1 %164 }
 0x1aa   :  { %v872_v52 = vmul.f32 %v165_v51, %v847_v0  ;;  %v875_v53 = vmul.f32 %v165_v51, %v849_v1 }
 0x1ac   :  { %v177_v55 = vrot.slane %v872_v52, 4  ;;  %v183_v56 = vrot.slane %v875_v53, 4 }
 0x1ae   :  { %v213_v57 = vmax.f32 %v872_v52, %v177_v55  ;;  %v219_v58 = vmax.f32 %v875_v53, %v183_v56  ;;  %v178_v60 = vadd.f32 %v177_v55, %v872_v52  ;;  %v184_v0 = vadd.f32 %v183_v56, %v875_v53 }
 0x1b0   :  { %v214_v1 = vrot.slane %v213_v57, 2  ;;  %v220_v62 = vrot.slane %v219_v58, 2  ;;  %v179_v8 = vrot.slane %v178_v60, 2  ;;  %v185_v9 = vrot.slane %v184_v0, 2 }
 0x1b1   :  { %v172_v61 = vpop.permute.xlu1 %171 }
 0x1b2   :  { %v884_v63 = vmul.f32 %v172_v61, %v853_v3  ;;  %v887_v2 = vmul.f32 %v172_v61, %v855_v4  ;;  %v215_v10 = vmax.f32 %v213_v57, %v214_v1  ;;  %v221_v11 = vmax.f32 %v219_v58, %v220_v62 }
 0x1b3   :  { %v180_v21 = vadd.f32 %v179_v8, %v178_v60  ;;  %v186_v22 = vadd.f32 %v185_v9, %v184_v0  ;;  %v541_v1 = vstv %s918_s5  ;;  %s790_s5 = smov [#allocation12]  }
 0x1b4   :  { %v189_v6 = vrot.slane %v884_v63, 4  ;;  %v195_v7 = vrot.slane %v887_v2, 4  ;;  %v216_v19 = vrot.slane %v215_v10, 1  ;;  %v222_v20 = vrot.slane %v221_v11, 1  ;;  %s609_s18 = sshll.u32 %s790_s5, 4  ;;  %s610_s18 = int_to_ptr.vmem [resolvable:$true] %s609_s18 }
 0x1b5   :  { %v181_v32 = vrot.slane %v180_v21, 1  ;;  %v187_v33 = vrot.slane %v186_v22, 1 }
 0x1b6   :  { %v190_v12 = vadd.f32 %v189_v6, %v884_v63  ;;  %v196_v13 = vadd.f32 %v195_v7, %v887_v2  ;;  %v225_v14 = vmax.f32 %v884_v63, %v189_v6  ;;  %v231_v3 = vmax.f32 %v887_v2, %v195_v7 }
 0x1b7   :  { %v217_v34 = vmax.f32 %v215_v10, %v216_v19  ;;  %v223_v36 = vmax.f32 %v221_v11, %v222_v20  ;;  %v182_v43 = vadd.f32 %v181_v32, %v180_v21  ;;  %v188_v44 = vadd.f32 %v187_v33, %v186_v22 }
 0x1b8   :  { %v191_v4 = vrot.slane %v190_v12, 2  ;;  %v197_v16 = vrot.slane %v196_v13, 2  ;;  %v226_v17 = vrot.slane %v225_v14, 2  ;;  %v232_v18 = vrot.slane %v231_v3, 2 }
 0x1b9   :  { %v208_v48 = vmul.f32 %v207_v45, %v182_v43  ;;  %v209_v49 = vmul.f32 %v207_v45, %v188_v44 }
 0x1ba   :  { %v227_v23 = vmax.f32 %v225_v14, %v226_v17  ;;  %v233_v24 = vmax.f32 %v231_v3, %v232_v18  ;;  %v192_v25 = vadd.f32 %v191_v4, %v190_v12  ;;  %v198_v26 = vadd.f32 %v197_v16, %v196_v13 }
 0x1bc   :  { %v228_v28 = vrot.slane %v227_v23, 1  ;;  %v234_v29 = vrot.slane %v233_v24, 1  ;;  %v193_v30 = vrot.slane %v192_v25, 1  ;;  %v199_v31 = vrot.slane %v198_v26, 1 }
 0x1be   :  { %v229_v35 = vmax.f32 %v227_v23, %v228_v28  ;;  %v235_v37 = vmax.f32 %v233_v24, %v234_v29  ;;  %v194_v41 = vadd.f32 %v193_v30, %v192_v25  ;;  %v200_v42 = vadd.f32 %v199_v31, %v198_v26 }
 0x1c0   :  { %v368_v39 = vsel %vm115_vm1, %v229_v35, %v217_v34  ;;  %v369_v40 = vsel %vm115_vm1, %v235_v37, %v223_v36  ;;  %v210_v46 = vmul.f32 %v207_v45, %v194_v41  ;;  %v211_v47 = vmul.f32 %v207_v45, %v200_v42 }
 0x1c1   :  { %388 = vmatmul.f32.vlgmr.msra.gmra.mxu1 %v368_v39  ;;  %408 = vmatmul.f32.vlgmr.msra.gmra.mxu2 %v369_v40 }
 0x1c2   :  { %428 = vmatmul.f32.vlgmr.msra.gmra.mxu3 %v368_v39  ;;  %448 = vmatmul.f32.vlgmr.msrb.gmra.mxu0 %v369_v40  ;;  %v456_v50 = vsel %vm115_vm1, %v210_v46, %v208_v48  ;;  %v457_v51 = vsel %vm115_vm1, %v211_v47, %v209_v49 }
 0x1c9   :  { %476 = vmatmul.f32.vlgmr.msrb.gmra.mxu1 %v456_v50  ;;  %496 = vmatmul.f32.vlgmr.msrb.gmra.mxu2 %v457_v51 }
 0x1ca   :  { %516 = vmatmul.f32.vlgmr.msrb.gmra.mxu3 %v456_v50  ;;  %536 = vmatmul.f32.vlgmr.msra.gmra.mxu0 %v457_v51 }
 0x23e   :  { %v389_v54 = vpop.f32.mrf.mxu1 }
 0x23f   :  { %v449_v56 = vpop.f32.mrf.mxu0 }
 0x244   :  { %v409_v55 = vpop.f32.mrf.mxu2 }
 0x245   :  { %v429_v57 = vpop.f32.mrf.mxu3  ;;  %v410_v58 = vadd.f32 %v409_v55, %v389_v54 }
 0x246   :  { %v477_v60 = vpop.f32.mrf.mxu1  ;;  %v450_v59 = vadd.f32 %v449_v56, %v429_v57 }
 0x247   :  { %v478_v0 = vadd.f32 %v477_v60, %v410_v58  ;;  %v537_v7 = vpop.f32.mrf.mxu0 }
 0x24c   :  { %v497_v61 = vpop.f32.mrf.mxu2 }
 0x24d   :  { %v498_v62 = vadd.f32 %v497_v61, %v478_v0  ;;  %v517_v5 = vpop.f32.mrf.mxu3 }
 0x24e   :  { %v518_v6 = vadd.f32 %v517_v5, %v450_v59 }
 0x24f   :  { %v542_v8 = vadd.f32 %v541_v1, %v498_v62 }
 0x250   :  { %v538_v9 = vadd.f32 %v537_v7, %v518_v6 }
 0x251   :  { %v544_v10 = vsub.f32 0.0, %v542_v8 }
 0x252   :  { %v543_v11 = vadd.f32 %v541_v1, %v538_v9 }
 0x253   :  { %v546_v12 = vmul.f32 1.442695, %v544_v10 }
 0x254   :  { %v545_v13 = vsub.f32 0.0, %v543_v11 }
 0x255   :  { %646 = vpow2.f32 %v546_v12 }
 0x256   :  { %v548_v14 = vmul.f32 1.442695, %v545_v13 }
 0x258   :  { %648 = vpow2.f32 %v548_v14 }
 0x25b   :  { %v647_v3 = vpop.eup %646 }
 0x25c   :  { %v550_v15 = vadd.f32 1.0, %v647_v3 }
 0x25e   :  { %v649_v4 = vpop.eup %648  ;;  %650 = vrcp.f32 %v550_v15  ;;  %vm557_vm10 = vweird.f32 %v550_v15  ;;  %v563_v28 = vand.u32 2147483648, %v550_v15  ;;  %v561_v29 = vand.u32 2147483647, %v550_v15 }
 0x25f   :  { %v551_v16 = vadd.f32 1.0, %v649_v4 }
 0x260   :  { %v564_v34 = vor.u32 1.1754944e-38, %v563_v28  ;;  %vm562_vm0 = vcmp.eq.f32.partialorder %v561_v29, 8.507059e+37 }
 0x261   :  { %652 = vrcp.f32 %v551_v16  ;;  %v578_v24 = vand.u32 2147483648, %v551_v16  ;;  %v576_v27 = vand.u32 2147483647, %v551_v16  ;;  %vm572_vm12 = vweird.f32 %v551_v16 }
 0x263   :  { %v579_v31 = vor.u32 1.1754944e-38, %v578_v24  ;;  %vm577_vm14 = vcmp.eq.f32.partialorder %v576_v27, 8.507059e+37 }
 0x264   :  { %v651_v17 = vpop.eup %650 }
 0x265   :  { %v553_v18 = vmul.f32 %v651_v17, %v550_v15  ;;  %vm558_vm8 = vweird.f32 %v651_v17 }
 0x266   :  { %vm559_vm11 = vmor %vm557_vm10, %vm558_vm8 }
 0x267   :  { %v653_v19 = vpop.eup %652  ;;  %v554_v20 = vsub.f32 1.0, %v553_v18 }
 0x268   :  { %v568_v21 = vmul.f32 %v653_v19, %v551_v16  ;;  %vm573_vm9 = vweird.f32 %v653_v19 }
 0x269   :  { %v555_v22 = vmul.f32 %v651_v17, %v554_v20  ;;  %vm574_vm13 = vmor %vm572_vm12, %vm573_vm9 }
 0x26a   :  { %v569_v23 = vsub.f32 1.0, %v568_v21 }
 0x26b   :  { %v556_v25 = vadd.f32 %v651_v17, %v555_v22 }
 0x26c   :  { %v570_v26 = vmul.f32 %v653_v19, %v569_v23 }
 0x26d   :  { %v560_v33 = vsel %vm559_vm11, %v651_v17, %v556_v25 }
 0x26e   :  { %v571_v30 = vadd.f32 %v653_v19, %v570_v26  ;;  %v565_v37 = vsel %vm562_vm0, %v564_v34, %v560_v33 }
 0x270   :  { %v575_v32 = vsel %vm574_vm13, %v653_v19, %v571_v30 }
 0x271   :  { %v580_v35 = vsel %vm577_vm14, %v579_v31, %v575_v32 }
 0x272   :  { %v584_v36 = vrot.slane %v580_v35, 7 }
 0x274   :  { %v586_v38 = vsel %vm585_vm15, %v565_v37, %v584_v36  ;;  %v587_v39 = vsel %vm115_vm1, %v565_v37, %v584_v36 }
 0x275   :  { %v588_v40 = vrot.slane %v587_v39, 1  ;;  %v589_v41 = vperm.slane %v586_v38, 0  ;;  %v590_v42 = vperm.slane %v586_v38, 1 }
 0x277   :  { %v591_v43 = vperm.slane %v588_v40, 0  ;;  %v592_v44 = vperm.slane %v588_v40, 1  ;;  %v597_v45 = vmul.f32 %v589_v41, %v872_v52  ;;  %v598_v46 = vmul.f32 %v590_v42, %v875_v53 }
 0x279   :  { %v599_v47 = vmul.f32 %v591_v43, %v884_v63  ;;  %v600_v48 = vmul.f32 %v592_v44, %v887_v2  ;;  %601 = vst [vmem:[#allocation12] sm:$0xff] %v597_v45 }
 0x27a   :  { %602 = vst [vmem:[#allocation12 + $0x8] sm:$0xff] %v598_v46 }
 0x27b   :  { %603 = vst [vmem:[#allocation12 + $0x10] sm:$0xff] %v599_v47 }
 0x27c   :  { %604 = vst [vmem:[#allocation12 + $0x18] sm:$0xff] %v600_v48 }
 0x27d   :  { %617 = dma.vmem_to_hbm [thread:$0]  %s610_s18, 512, %s612_s21, [#allocation6], %s784_s7, %s784_s7, %s785_s8  }
 0x27e   :  { %780 = dma.done.wait [#allocation6], 512  }
 0x27f   :  { %781 = vsyncadd [#allocation6], 4294966784 }
 0x280   :  { %622 = vsyncpa [#allocation5], 1 }
 0x281   :  { %623 = vsyncpa [#allocation8], 1 }
 0x282   :  { %624 = vsyncpa [#allocation11], 1 }
 0x283   :  { %625 = vsyncpa [#allocation6], 1 }

</bundles_post_ra>
